<compile_context>
chip_gen: v7x
topology: tpu7x:2x2x1
jax: 0.10.0
libtpu: 0.0.40
codegen_flags: <defaults>
</compile_context>

<pallas_src>
import functools

import jax
import jax.numpy as jnp
from jax.experimental import pallas as pl
from jax.experimental.pallas import tpu as pltpu  # noqa: F401  (TPU backend)


# ----------------------------------------------------------------------------
# Host-side weight staging helpers (tiny, XLA-fused; weights only, no activations)
# ----------------------------------------------------------------------------
def _conv_toeplitz(w_hwio, out_w):
    """Turn a (3,3,Cin,Cout) conv weight into 3 Toeplitz matrices.

    Returns M of shape (3, (out_w+2)*Cin, out_w*Cout) with
        M[i, wj*Cin + c1, w*Cout + c2] = w_hwio[i, wj - w, c1, c2]   (0 <= wj - w <= 2)
    so that   conv_out[(s,h), w*Cout + c2] = sum_i  X_i[(s,h), :] @ M[i]
    where     X_i[(s,h), wj*Cin + c1]      = input[(s, h+i), wj*Cin + c1].
    """
    kh, kw, cin, cout = w_hwio.shape
    in_w = out_w + kw - 1
    m = jnp.zeros((kh, in_w, cin, out_w, cout), w_hwio.dtype)
    for j in range(kw):
        for w in range(out_w):
            m = m.at[:, w + j, :, w, :].set(w_hwio[:, j, :, :])
    return m.reshape(kh, in_w * cin, out_w * cout)


# ----------------------------------------------------------------------------
# The single fused Pallas kernel
# ----------------------------------------------------------------------------
def _make_fused_kernel(n_batch, n_lin_pairs, main_width, aux_width, out_lanes):
    N = n_batch
    B2 = 2 * N                      # stacked sample-branches, s = n*2 + branch
    f32, bf16 = jnp.float32, jnp.bfloat16

    def mm(a, b):                   # bf16 operands, f32 MXU accumulation
        return jnp.dot(a.astype(bf16), b, preferred_element_type=f32)

    def kernel(*refs):
        it = iter(refs)
        x_pre = next(it)                      # (6, B2*6, 14) f32   [k = i*2 + parity]
        m1, b1 = next(it), next(it)           # (3, 14, 384) bf16,  (1, 384) f32
        m2, b2 = next(it), next(it)           # (3, 192, 128) bf16, (1, 128) f32
        m3, b3 = next(it), next(it)           # (3, 128, 128) bf16, (1, 128) f32
        lin = [(next(it), next(it)) for _ in range(n_lin_pairs)]
        wa1, ba1 = next(it), next(it)         # (2, 128, 128) bf16, (1, 128) f32
        wa2, ba2 = next(it), next(it)         # (128, aux_width) bf16, (1, aux_width) f32
        out_ref = next(it)                    # (N, out_lanes) f32

        # ---- conv1 (1->32, 3x3) + ReLU, computed separately per output-row parity -----
        y1 = []
        for par in range(2):
            acc = jnp.zeros((B2 * 6, m1.shape[2]), f32)
            for i in range(3):
                acc = acc + mm(x_pre[2 * i + par], m1[i])
            y1.append(jnp.maximum(acc + b1[...], 0.0))        # rows=(s,h'), lanes=(w,c)

        # ---- MaxPool2d(2,2) fused: rows already parity-split, lanes pooled blockwise ---
        hp = jnp.maximum(y1[0], y1[1])                         # (B2*6, 384)
        ev = jnp.concatenate([hp[:, (2 * w) * 32:(2 * w + 1) * 32] for w in range(6)], axis=1)
        od = jnp.concatenate([hp[:, (2 * w + 1) * 32:(2 * w + 2) * 32] for w in range(6)], axis=1)
        p1 = jnp.maximum(ev, od)                               # (B2*6, 192)  lanes=(w',c)

        # ---- conv2 (32->32, 3x3) + ReLU -------------------------------------------------
        acc = jnp.zeros((B2 * 4, m2.shape[2]), f32)
        for i in range(3):
            xi = jnp.concatenate([p1[s * 6 + i:s * 6 + i + 4, :] for s in range(B2)], axis=0)
            acc = acc + mm(xi, m2[i])
        y2 = jnp.maximum(acc + b2[...], 0.0)                   # (B2*4, 128) rows=(s,h2) lanes=(w2,c)

        # ---- main head: Flatten(cat(x1,x2)) -> Linear/ReLU ... -> Linear -> Sigmoid ------
        w0, b0 = lin[0]                                        # (8, 128, L0) chunked 1024-in weight
        acc = jnp.zeros((N, w0.shape[2]), f32)
        for r in range(8):                                     # chunk r = (branch, h2); y2 row = n*8 + r
            chunk = jnp.concatenate([y2[n * 8 + r:n * 8 + r + 1, :] for n in range(N)], axis=0)
            acc = acc + mm(chunk, w0[r])
        h = jnp.maximum(acc + b0[...], 0.0)
        for (w, b) in lin[1:-1]:
            h = jnp.maximum(mm(h, w[...]) + b[...], 0.0)
        w_out, b_out = lin[-1]
        logits = mm(h, w_out[...]) + b_out[...]                # (N, main_width)
        main = pl.reciprocal(1.0 + jnp.exp(-logits), approx=True)   # sigmoid on EUP

        # ---- aux head, applied to BOTH stacked branches at once --------------------------
        acc = jnp.zeros((B2 * 2, m3.shape[2]), f32)
        for i in range(3):
            xi = jnp.concatenate([y2[s * 4 + i:s * 4 + i + 2, :] for s in range(B2)], axis=0)
            acc = acc + mm(xi, m3[i])
        y3 = jnp.maximum(acc + b3[...], 0.0)                   # (B2*2, 128) rows=(s,h3) lanes=(w3,c3)

        acc = jnp.zeros((B2, wa1.shape[2]), f32)
        for r in range(2):                                     # chunk r = h3; y3 row = s*2 + r
            chunk = jnp.concatenate([y3[s * 2 + r:s * 2 + r + 1, :] for s in range(B2)], axis=0)
            acc = acc + mm(chunk, wa1[r])
        a1 = jnp.maximum(acc + ba1[...], 0.0)                  # (B2, 128)
        a2 = mm(a1, wa2[...]) + ba2[...]                       # (B2, aux_width), rows s = n*2+branch

        # torch: class_x1 = aux(x2) (branch 1), class_x2 = aux(x1) (branch 0)
        cx1 = jnp.concatenate([a2[n * 2 + 1:n * 2 + 2, :] for n in range(N)], axis=0)
        cx2 = jnp.concatenate([a2[n * 2:n * 2 + 1, :] for n in range(N)], axis=0)

        pad = jnp.zeros((N, out_lanes - main_width - 2 * aux_width), f32)
        out_ref[...] = jnp.concatenate([main, cx1, cx2, pad], axis=1)   # lane-dense packed store

    return kernel


# ----------------------------------------------------------------------------
# Forward pass (mirrors Class_aux_model.forward)
# ----------------------------------------------------------------------------
def class_aux_forward(params, input_data, training=True):
    x = input_data.astype(jnp.float32)
    N = x.shape[0]
    assert x.shape[1:] == (2, 14, 14), "Class_aux_model expects (N, 2, 14, 14) input"
    assert len(params["lin"]) >= 1
    B2 = 2 * N
    bf16, f32 = jnp.bfloat16, jnp.float32

    # Stack branches on the batch axis: s = n*2 + branch  (branch 0 = x1, branch 1 = x2).
    xs = x.reshape(B2, 14, 14)
    # conv1 inputs pre-split by output-row parity:
    #   x_pre[i*2+par][(s, h'), w] = xs[s, 2*h' + par + i, w]
    x_pre = jnp.stack(
        [xs[:, par + i: par + i + 12: 2, :].reshape(B2 * 6, 14)
         for i in range(3) for par in range(2)], axis=0)                 # (6, B2*6, 14)

    # Conv weights -> Toeplitz matmul form (weights only; independent of batch).
    w1, bc1 = params["conv1"]
    w2, bc2 = params["conv2"]
    w3, bc3 = params["aux_conv"]
    m1 = _conv_toeplitz(w1, 12).astype(bf16)      # (3, 14, 384)
    m2 = _conv_toeplitz(w2, 4).astype(bf16)       # (3, 192, 128)
    m3 = _conv_toeplitz(w3, 2).astype(bf16)       # (3, 128, 128)
    b1t = jnp.tile(bc1, 12).reshape(1, -1).astype(f32)
    b2t = jnp.tile(bc2, 4).reshape(1, -1).astype(f32)
    b3t = jnp.tile(bc3, 2).reshape(1, -1).astype(f32)

    # Linear stack.  The 1024-in weight is stored in the PyTorch NCHW-flatten row order
    # (branch, c, h, w); re-chunk it to the kernel's (branch, h, w, c) layout.
    lin_pairs = list(params["lin"]) + [params["lin_out"]]
    w0, b0 = lin_pairs[0]
    out0 = w0.shape[1]
    w0k = (w0.reshape(2, 32, 4, 4, out0).transpose(0, 2, 3, 1, 4)
             .reshape(8, 128, out0)).astype(bf16)
    kern_lin = [(w0k, b0.reshape(1, -1).astype(f32))]
    for (w, b) in lin_pairs[1:]:
        kern_lin.append((w.astype(bf16), b.reshape(1, -1).astype(f32)))

    # Aux linear weights (aux_fc1 rows are PyTorch (c,h,w)-flatten order -> (h, w, c) chunks).
    wa1, ba1 = params["aux_fc1"]
    wa2, ba2 = params["aux_fc2"]
    wa1k = (wa1.reshape(64, 2, 2, wa1.shape[1]).transpose(1, 2, 0, 3)
               .reshape(2, 128, wa1.shape[1])).astype(bf16)

    main_width = lin_pairs[-1][0].shape[1]
    aux_width = wa2.shape[1]
    out_lanes = 128
    assert main_width + 2 * aux_width <= out_lanes

    args = [x_pre, m1, b1t, m2, b2t, m3, b3t]
    for (w, b) in kern_lin:
        args += [w, b]
    args += [wa1k, ba1.reshape(1, -1).astype(f32),
             wa2.astype(bf16), ba2.reshape(1, -1).astype(f32)]

    kernel = _make_fused_kernel(N, len(kern_lin), main_width, aux_width, out_lanes)
    packed = pl.pallas_call(
        kernel,
        out_shape=jax.ShapeDtypeStruct((N, out_lanes), jnp.float32),
    )(*args)

    main = packed[:, :main_width]
    if not training:
        return jnp.squeeze(main)
    class_x1 = packed[:, main_width:main_width + aux_width]
    class_x2 = packed[:, main_width + aux_width:main_width + 2 * aux_width]
    return jnp.squeeze(main), jnp.squeeze(class_x1), jnp.squeeze(class_x2)


# ----------------------------------------------------------------------------
# Parameter init (shapes from Class_aux_model.__init__; conv weights stored HWIO,
# linear weights stored (in, out) with the first / aux-fc1 rows in PyTorch flatten order)
# ----------------------------------------------------------------------------
def init_params(key, lin_layers, one_hot_labels=True):
    keys = iter(jax.random.split(key, 32))

    def nrm(shape, scale):
        return scale * jax.random.normal(next(keys), shape, dtype=jnp.float32)

    def conv_p(ci, co, k):
        s = (1.0 / (ci * k * k)) ** 0.5
        return (nrm((k, k, ci, co), s), nrm((co,), s))

    def lin_p(ci, co):
        s = (1.0 / ci) ** 0.5
        return (nrm((ci, co), s), nrm((co,), s))

    params = {
        "conv1": conv_p(1, 32, 3),            # nn.Conv2d(1, 32, 3)
        "conv2": conv_p(32, 32, 3),           # nn.Conv2d(32, 32, 3)
        "aux_conv": conv_p(32, 64, 3),        # nn.Conv2d(32, 64, 3)
        "aux_fc1": lin_p(256, 128),           # nn.Linear(256, 128)
        "aux_fc2": lin_p(128, 10 if one_hot_labels else 1),
    }
    dims = [1024] + list(lin_layers)
    params["lin"] = [lin_p(dims[i], dims[i + 1]) for i in range(len(lin_layers))]
    params["lin_out"] = lin_p(lin_layers[-1], 2 if one_hot_labels else 1)
    return params


# ----------------------------------------------------------------------------
# Pure-JAX f32 reference (used only for a numerical sanity check in __main__)
# ----------------------------------------------------------------------------
def reference_forward(params, input_data):
    x = input_data.astype(jnp.float32)
    N = x.shape[0]
    relu = lambda v: jnp.maximum(v, 0.0)

    def conv(z, w_hwio, b):
        y = jax.lax.conv_general_dilated(
            z, w_hwio, window_strides=(1, 1), padding="VALID",
            dimension_numbers=("NCHW", "HWIO", "NCHW"))
        return y + b[None, :, None, None]

    def pool2(z):
        B, C, H, W = z.shape
        return z.reshape(B, C, H // 2, 2, W // 2, 2).max(axis=(3, 5))

    def branch(z):
        z = relu(conv(z, *params["conv1"]))
        z = pool2(z)
        return relu(conv(z, *params["conv2"]))

    f1, f2 = branch(x[:, 0:1]), branch(x[:, 1:2])
    h = jnp.concatenate([f1, f2], axis=1).reshape(N, -1)     # NCHW flatten (PyTorch order)
    for (w, b) in params["lin"]:
        h = relu(h @ w + b)
    w, b = params["lin_out"]
    main = jax.nn.sigmoid(h @ w + b)

    def aux(z):
        z = relu(conv(z, *params["aux_conv"])).reshape(N, -1)
        w1, b1 = params["aux_fc1"]
        z = relu(z @ w1 + b1)
        w2, b2 = params["aux_fc2"]
        return z @ w2 + b2

    return jnp.squeeze(main), jnp.squeeze(aux(f2)), jnp.squeeze(aux(f1))


# ----------------------------------------------------------------------------
if __name__ == "__main__":
    key = jax.random.PRNGKey(0)
    k_param, k_x = jax.random.split(key)

    lin_layers = [64, 32]
    params = init_params(k_param, lin_layers, one_hot_labels=True)
    x = jax.random.normal(k_x, (2, 2, 14, 14), dtype=jnp.float32)

    fwd = jax.jit(functools.partial(class_aux_forward, training=True))
    main_out, class_x1, class_x2 = fwd(params, x)
    jax.block_until_ready((main_out, class_x1, class_x2))

    assert main_out.shape == (2, 2)
    assert class_x1.shape == (2, 10)
    assert class_x2.shape == (2, 10)
    assert bool(jnp.all(jnp.isfinite(main_out)))

    # Numerical sanity check vs. a pure-JAX f32 reference (kernel matmuls use bf16 operands).
    r_main, r_cx1, r_cx2 = reference_forward(params, x)
    assert float(jnp.max(jnp.abs(main_out - r_main))) < 0.05
    assert float(jnp.max(jnp.abs(class_x1 - r_cx1))) < 0.15
    assert float(jnp.max(jnp.abs(class_x2 - r_cx2))) < 0.15

    print("KERNEL_OK")
</pallas_src>

<mosaic_0001>
module attributes {stable_mosaic.version = 11 : i64} {
  func.func @kernel(%arg0: memref<6x24x14xf32, #tpu.memory_space<vmem>>, %arg1: memref<3x14x384xbf16, #tpu.memory_space<vmem>>, %arg2: memref<1x384xf32, #tpu.memory_space<vmem>>, %arg3: memref<3x192x128xbf16, #tpu.memory_space<vmem>>, %arg4: memref<1x128xf32, #tpu.memory_space<vmem>>, %arg5: memref<3x128x128xbf16, #tpu.memory_space<vmem>>, %arg6: memref<1x128xf32, #tpu.memory_space<vmem>>, %arg7: memref<8x128x64xbf16, #tpu.memory_space<vmem>>, %arg8: memref<1x64xf32, #tpu.memory_space<vmem>>, %arg9: memref<64x32xbf16, #tpu.memory_space<vmem>>, %arg10: memref<1x32xf32, #tpu.memory_space<vmem>>, %arg11: memref<32x2xbf16, #tpu.memory_space<vmem>>, %arg12: memref<1x2xf32, #tpu.memory_space<vmem>>, %arg13: memref<2x128x128xbf16, #tpu.memory_space<vmem>>, %arg14: memref<1x128xf32, #tpu.memory_space<vmem>>, %arg15: memref<128x10xbf16, #tpu.memory_space<vmem>>, %arg16: memref<1x10xf32, #tpu.memory_space<vmem>>, %arg17: memref<2x128xf32, #tpu.memory_space<vmem>>) attributes {dimension_semantics = [], scalar_prefetch = 0 : i64, scratch_operands = 0 : i64, tpu.core_type = #tpu.core_type<tc>} {
    %cst = arith.constant 0.000000e+00 : f32
    %0 = vector.broadcast %cst : f32 to vector<24x384xf32>
    %c0 = arith.constant 0 : index
    %c0_0 = arith.constant 0 : index
    %c0_1 = arith.constant 0 : index
    %1 = vector.load %arg0[%c0, %c0_0, %c0_1] : memref<6x24x14xf32, #tpu.memory_space<vmem>>, vector<1x24x14xf32>
    %2 = vector.shape_cast %1 : vector<1x24x14xf32> to vector<24x14xf32>
    %c0_2 = arith.constant 0 : index
    %c0_3 = arith.constant 0 : index
    %c0_4 = arith.constant 0 : index
    %3 = vector.load %arg1[%c0_2, %c0_3, %c0_4] : memref<3x14x384xbf16, #tpu.memory_space<vmem>>, vector<1x14x384xbf16>
    %4 = vector.shape_cast %3 : vector<1x14x384xbf16> to vector<14x384xbf16>
    %5 = arith.truncf %2 : vector<24x14xf32> to vector<24x14xbf16>
    %cst_5 = arith.constant dense<0.000000e+00> : vector<24x384xf32>
    %6 = tpu.matmul %5, %4, %cst_5 {dimension_numbers = #tpu.dot_dimension_numbers<[1], [0], [0], [1], [0, 0, 1, 1], [], []>} : vector<24x14xbf16>, vector<14x384xbf16>, vector<24x384xf32> -> vector<24x384xf32>
    %7 = arith.addf %0, %6 : vector<24x384xf32>
    %c2 = arith.constant 2 : index
    %c0_6 = arith.constant 0 : index
    %c0_7 = arith.constant 0 : index
    %8 = vector.load %arg0[%c2, %c0_6, %c0_7] : memref<6x24x14xf32, #tpu.memory_space<vmem>>, vector<1x24x14xf32>
    %9 = vector.shape_cast %8 : vector<1x24x14xf32> to vector<24x14xf32>
    %c1 = arith.constant 1 : index
    %c0_8 = arith.constant 0 : index
    %c0_9 = arith.constant 0 : index
    %10 = vector.load %arg1[%c1, %c0_8, %c0_9] : memref<3x14x384xbf16, #tpu.memory_space<vmem>>, vector<1x14x384xbf16>
    %11 = vector.shape_cast %10 : vector<1x14x384xbf16> to vector<14x384xbf16>
    %12 = arith.truncf %9 : vector<24x14xf32> to vector<24x14xbf16>
    %cst_10 = arith.constant dense<0.000000e+00> : vector<24x384xf32>
    %13 = tpu.matmul %12, %11, %cst_10 {dimension_numbers = #tpu.dot_dimension_numbers<[1], [0], [0], [1], [0, 0, 1, 1], [], []>} : vector<24x14xbf16>, vector<14x384xbf16>, vector<24x384xf32> -> vector<24x384xf32>
    %14 = arith.addf %7, %13 : vector<24x384xf32>
    %c4 = arith.constant 4 : index
    %c0_11 = arith.constant 0 : index
    %c0_12 = arith.constant 0 : index
    %15 = vector.load %arg0[%c4, %c0_11, %c0_12] : memref<6x24x14xf32, #tpu.memory_space<vmem>>, vector<1x24x14xf32>
    %16 = vector.shape_cast %15 : vector<1x24x14xf32> to vector<24x14xf32>
    %c2_13 = arith.constant 2 : index
    %c0_14 = arith.constant 0 : index
    %c0_15 = arith.constant 0 : index
    %17 = vector.load %arg1[%c2_13, %c0_14, %c0_15] : memref<3x14x384xbf16, #tpu.memory_space<vmem>>, vector<1x14x384xbf16>
    %18 = vector.shape_cast %17 : vector<1x14x384xbf16> to vector<14x384xbf16>
    %19 = arith.truncf %16 : vector<24x14xf32> to vector<24x14xbf16>
    %cst_16 = arith.constant dense<0.000000e+00> : vector<24x384xf32>
    %20 = tpu.matmul %19, %18, %cst_16 {dimension_numbers = #tpu.dot_dimension_numbers<[1], [0], [0], [1], [0, 0, 1, 1], [], []>} : vector<24x14xbf16>, vector<14x384xbf16>, vector<24x384xf32> -> vector<24x384xf32>
    %21 = arith.addf %14, %20 : vector<24x384xf32>
    %c0_17 = arith.constant 0 : index
    %c0_18 = arith.constant 0 : index
    %22 = vector.load %arg2[%c0_17, %c0_18] : memref<1x384xf32, #tpu.memory_space<vmem>>, vector<1x384xf32>
    %23 = vector.broadcast %22 : vector<1x384xf32> to vector<24x384xf32>
    %24 = arith.addf %21, %23 : vector<24x384xf32>
    %cst_19 = arith.constant 0.000000e+00 : f32
    %25 = vector.broadcast %cst_19 : f32 to vector<24x384xf32>
    %26 = arith.maximumf %24, %25 : vector<24x384xf32>
    %cst_20 = arith.constant 0.000000e+00 : f32
    %27 = vector.broadcast %cst_20 : f32 to vector<24x384xf32>
    %c1_21 = arith.constant 1 : index
    %c0_22 = arith.constant 0 : index
    %c0_23 = arith.constant 0 : index
    %28 = vector.load %arg0[%c1_21, %c0_22, %c0_23] : memref<6x24x14xf32, #tpu.memory_space<vmem>>, vector<1x24x14xf32>
    %29 = vector.shape_cast %28 : vector<1x24x14xf32> to vector<24x14xf32>
    %c0_24 = arith.constant 0 : index
    %c0_25 = arith.constant 0 : index
    %c0_26 = arith.constant 0 : index
    %30 = vector.load %arg1[%c0_24, %c0_25, %c0_26] : memref<3x14x384xbf16, #tpu.memory_space<vmem>>, vector<1x14x384xbf16>
    %31 = vector.shape_cast %30 : vector<1x14x384xbf16> to vector<14x384xbf16>
    %32 = arith.truncf %29 : vector<24x14xf32> to vector<24x14xbf16>
    %cst_27 = arith.constant dense<0.000000e+00> : vector<24x384xf32>
    %33 = tpu.matmul %32, %31, %cst_27 {dimension_numbers = #tpu.dot_dimension_numbers<[1], [0], [0], [1], [0, 0, 1, 1], [], []>} : vector<24x14xbf16>, vector<14x384xbf16>, vector<24x384xf32> -> vector<24x384xf32>
    %34 = arith.addf %27, %33 : vector<24x384xf32>
    %c3 = arith.constant 3 : index
    %c0_28 = arith.constant 0 : index
    %c0_29 = arith.constant 0 : index
    %35 = vector.load %arg0[%c3, %c0_28, %c0_29] : memref<6x24x14xf32, #tpu.memory_space<vmem>>, vector<1x24x14xf32>
    %36 = vector.shape_cast %35 : vector<1x24x14xf32> to vector<24x14xf32>
    %c1_30 = arith.constant 1 : index
    %c0_31 = arith.constant 0 : index
    %c0_32 = arith.constant 0 : index
    %37 = vector.load %arg1[%c1_30, %c0_31, %c0_32] : memref<3x14x384xbf16, #tpu.memory_space<vmem>>, vector<1x14x384xbf16>
    %38 = vector.shape_cast %37 : vector<1x14x384xbf16> to vector<14x384xbf16>
    %39 = arith.truncf %36 : vector<24x14xf32> to vector<24x14xbf16>
    %cst_33 = arith.constant dense<0.000000e+00> : vector<24x384xf32>
    %40 = tpu.matmul %39, %38, %cst_33 {dimension_numbers = #tpu.dot_dimension_numbers<[1], [0], [0], [1], [0, 0, 1, 1], [], []>} : vector<24x14xbf16>, vector<14x384xbf16>, vector<24x384xf32> -> vector<24x384xf32>
    %41 = arith.addf %34, %40 : vector<24x384xf32>
    %c5 = arith.constant 5 : index
    %c0_34 = arith.constant 0 : index
    %c0_35 = arith.constant 0 : index
    %42 = vector.load %arg0[%c5, %c0_34, %c0_35] : memref<6x24x14xf32, #tpu.memory_space<vmem>>, vector<1x24x14xf32>
    %43 = vector.shape_cast %42 : vector<1x24x14xf32> to vector<24x14xf32>
    %c2_36 = arith.constant 2 : index
    %c0_37 = arith.constant 0 : index
    %c0_38 = arith.constant 0 : index
    %44 = vector.load %arg1[%c2_36, %c0_37, %c0_38] : memref<3x14x384xbf16, #tpu.memory_space<vmem>>, vector<1x14x384xbf16>
    %45 = vector.shape_cast %44 : vector<1x14x384xbf16> to vector<14x384xbf16>
    %46 = arith.truncf %43 : vector<24x14xf32> to vector<24x14xbf16>
    %cst_39 = arith.constant dense<0.000000e+00> : vector<24x384xf32>
    %47 = tpu.matmul %46, %45, %cst_39 {dimension_numbers = #tpu.dot_dimension_numbers<[1], [0], [0], [1], [0, 0, 1, 1], [], []>} : vector<24x14xbf16>, vector<14x384xbf16>, vector<24x384xf32> -> vector<24x384xf32>
    %48 = arith.addf %41, %47 : vector<24x384xf32>
    %c0_40 = arith.constant 0 : index
    %c0_41 = arith.constant 0 : index
    %49 = vector.load %arg2[%c0_40, %c0_41] : memref<1x384xf32, #tpu.memory_space<vmem>>, vector<1x384xf32>
    %50 = vector.broadcast %49 : vector<1x384xf32> to vector<24x384xf32>
    %51 = arith.addf %48, %50 : vector<24x384xf32>
    %cst_42 = arith.constant 0.000000e+00 : f32
    %52 = vector.broadcast %cst_42 : f32 to vector<24x384xf32>
    %53 = arith.maximumf %51, %52 : vector<24x384xf32>
    %54 = arith.maximumf %26, %53 : vector<24x384xf32>
    %55 = vector.extract_strided_slice %54 {offsets = [0, 0], sizes = [24, 32], strides = [1, 1]} : vector<24x384xf32> to vector<24x32xf32>
    %56 = vector.extract_strided_slice %54 {offsets = [0, 64], sizes = [24, 32], strides = [1, 1]} : vector<24x384xf32> to vector<24x32xf32>
    %57 = vector.extract_strided_slice %54 {offsets = [0, 128], sizes = [24, 32], strides = [1, 1]} : vector<24x384xf32> to vector<24x32xf32>
    %58 = vector.extract_strided_slice %54 {offsets = [0, 192], sizes = [24, 32], strides = [1, 1]} : vector<24x384xf32> to vector<24x32xf32>
    %59 = vector.extract_strided_slice %54 {offsets = [0, 256], sizes = [24, 32], strides = [1, 1]} : vector<24x384xf32> to vector<24x32xf32>
    %60 = vector.extract_strided_slice %54 {offsets = [0, 320], sizes = [24, 32], strides = [1, 1]} : vector<24x384xf32> to vector<24x32xf32>
    %61 = tpu.concatenate %55, %56, %57, %58, %59, %60 in 1 : vector<24x32xf32>, vector<24x32xf32>, vector<24x32xf32>, vector<24x32xf32>, vector<24x32xf32>, vector<24x32xf32> -> vector<24x192xf32>
    %62 = vector.extract_strided_slice %54 {offsets = [0, 32], sizes = [24, 32], strides = [1, 1]} : vector<24x384xf32> to vector<24x32xf32>
    %63 = vector.extract_strided_slice %54 {offsets = [0, 96], sizes = [24, 32], strides = [1, 1]} : vector<24x384xf32> to vector<24x32xf32>
    %64 = vector.extract_strided_slice %54 {offsets = [0, 160], sizes = [24, 32], strides = [1, 1]} : vector<24x384xf32> to vector<24x32xf32>
    %65 = vector.extract_strided_slice %54 {offsets = [0, 224], sizes = [24, 32], strides = [1, 1]} : vector<24x384xf32> to vector<24x32xf32>
    %66 = vector.extract_strided_slice %54 {offsets = [0, 288], sizes = [24, 32], strides = [1, 1]} : vector<24x384xf32> to vector<24x32xf32>
    %67 = vector.extract_strided_slice %54 {offsets = [0, 352], sizes = [24, 32], strides = [1, 1]} : vector<24x384xf32> to vector<24x32xf32>
    %68 = tpu.concatenate %62, %63, %64, %65, %66, %67 in 1 : vector<24x32xf32>, vector<24x32xf32>, vector<24x32xf32>, vector<24x32xf32>, vector<24x32xf32>, vector<24x32xf32> -> vector<24x192xf32>
    %69 = arith.maximumf %61, %68 : vector<24x192xf32>
    %cst_43 = arith.constant 0.000000e+00 : f32
    %70 = vector.broadcast %cst_43 : f32 to vector<16x128xf32>
    %71 = vector.extract_strided_slice %69 {offsets = [0, 0], sizes = [4, 192], strides = [1, 1]} : vector<24x192xf32> to vector<4x192xf32>
    %72 = vector.extract_strided_slice %69 {offsets = [6, 0], sizes = [4, 192], strides = [1, 1]} : vector<24x192xf32> to vector<4x192xf32>
    %73 = vector.extract_strided_slice %69 {offsets = [12, 0], sizes = [4, 192], strides = [1, 1]} : vector<24x192xf32> to vector<4x192xf32>
    %74 = vector.extract_strided_slice %69 {offsets = [18, 0], sizes = [4, 192], strides = [1, 1]} : vector<24x192xf32> to vector<4x192xf32>
    %75 = tpu.concatenate %71, %72, %73, %74 in 0 : vector<4x192xf32>, vector<4x192xf32>, vector<4x192xf32>, vector<4x192xf32> -> vector<16x192xf32>
    %c0_44 = arith.constant 0 : index
    %c0_45 = arith.constant 0 : index
    %c0_46 = arith.constant 0 : index
    %76 = vector.load %arg3[%c0_44, %c0_45, %c0_46] : memref<3x192x128xbf16, #tpu.memory_space<vmem>>, vector<1x192x128xbf16>
    %77 = vector.shape_cast %76 : vector<1x192x128xbf16> to vector<192x128xbf16>
    %78 = arith.truncf %75 : vector<16x192xf32> to vector<16x192xbf16>
    %cst_47 = arith.constant dense<0.000000e+00> : vector<16x128xf32>
    %79 = tpu.matmul %78, %77, %cst_47 {dimension_numbers = #tpu.dot_dimension_numbers<[1], [0], [0], [1], [0, 0, 1, 1], [], []>} : vector<16x192xbf16>, vector<192x128xbf16>, vector<16x128xf32> -> vector<16x128xf32>
    %80 = arith.addf %70, %79 : vector<16x128xf32>
    %81 = vector.extract_strided_slice %69 {offsets = [1, 0], sizes = [4, 192], strides = [1, 1]} : vector<24x192xf32> to vector<4x192xf32>
    %82 = vector.extract_strided_slice %69 {offsets = [7, 0], sizes = [4, 192], strides = [1, 1]} : vector<24x192xf32> to vector<4x192xf32>
    %83 = vector.extract_strided_slice %69 {offsets = [13, 0], sizes = [4, 192], strides = [1, 1]} : vector<24x192xf32> to vector<4x192xf32>
    %84 = vector.extract_strided_slice %69 {offsets = [19, 0], sizes = [4, 192], strides = [1, 1]} : vector<24x192xf32> to vector<4x192xf32>
    %85 = tpu.concatenate %81, %82, %83, %84 in 0 : vector<4x192xf32>, vector<4x192xf32>, vector<4x192xf32>, vector<4x192xf32> -> vector<16x192xf32>
    %c1_48 = arith.constant 1 : index
    %c0_49 = arith.constant 0 : index
    %c0_50 = arith.constant 0 : index
    %86 = vector.load %arg3[%c1_48, %c0_49, %c0_50] : memref<3x192x128xbf16, #tpu.memory_space<vmem>>, vector<1x192x128xbf16>
    %87 = vector.shape_cast %86 : vector<1x192x128xbf16> to vector<192x128xbf16>
    %88 = arith.truncf %85 : vector<16x192xf32> to vector<16x192xbf16>
    %cst_51 = arith.constant dense<0.000000e+00> : vector<16x128xf32>
    %89 = tpu.matmul %88, %87, %cst_51 {dimension_numbers = #tpu.dot_dimension_numbers<[1], [0], [0], [1], [0, 0, 1, 1], [], []>} : vector<16x192xbf16>, vector<192x128xbf16>, vector<16x128xf32> -> vector<16x128xf32>
    %90 = arith.addf %80, %89 : vector<16x128xf32>
    %91 = vector.extract_strided_slice %69 {offsets = [2, 0], sizes = [4, 192], strides = [1, 1]} : vector<24x192xf32> to vector<4x192xf32>
    %92 = vector.extract_strided_slice %69 {offsets = [8, 0], sizes = [4, 192], strides = [1, 1]} : vector<24x192xf32> to vector<4x192xf32>
    %93 = vector.extract_strided_slice %69 {offsets = [14, 0], sizes = [4, 192], strides = [1, 1]} : vector<24x192xf32> to vector<4x192xf32>
    %94 = vector.extract_strided_slice %69 {offsets = [20, 0], sizes = [4, 192], strides = [1, 1]} : vector<24x192xf32> to vector<4x192xf32>
    %95 = tpu.concatenate %91, %92, %93, %94 in 0 : vector<4x192xf32>, vector<4x192xf32>, vector<4x192xf32>, vector<4x192xf32> -> vector<16x192xf32>
    %c2_52 = arith.constant 2 : index
    %c0_53 = arith.constant 0 : index
    %c0_54 = arith.constant 0 : index
    %96 = vector.load %arg3[%c2_52, %c0_53, %c0_54] : memref<3x192x128xbf16, #tpu.memory_space<vmem>>, vector<1x192x128xbf16>
    %97 = vector.shape_cast %96 : vector<1x192x128xbf16> to vector<192x128xbf16>
    %98 = arith.truncf %95 : vector<16x192xf32> to vector<16x192xbf16>
    %cst_55 = arith.constant dense<0.000000e+00> : vector<16x128xf32>
    %99 = tpu.matmul %98, %97, %cst_55 {dimension_numbers = #tpu.dot_dimension_numbers<[1], [0], [0], [1], [0, 0, 1, 1], [], []>} : vector<16x192xbf16>, vector<192x128xbf16>, vector<16x128xf32> -> vector<16x128xf32>
    %100 = arith.addf %90, %99 : vector<16x128xf32>
    %c0_56 = arith.constant 0 : index
    %c0_57 = arith.constant 0 : index
    %101 = vector.load %arg4[%c0_56, %c0_57] : memref<1x128xf32, #tpu.memory_space<vmem>>, vector<1x128xf32>
    %102 = vector.broadcast %101 : vector<1x128xf32> to vector<16x128xf32>
    %103 = arith.addf %100, %102 : vector<16x128xf32>
    %cst_58 = arith.constant 0.000000e+00 : f32
    %104 = vector.broadcast %cst_58 : f32 to vector<16x128xf32>
    %105 = arith.maximumf %103, %104 : vector<16x128xf32>
    %cst_59 = arith.constant 0.000000e+00 : f32
    %106 = vector.broadcast %cst_59 : f32 to vector<2x64xf32>
    %107 = vector.extract_strided_slice %105 {offsets = [0, 0], sizes = [1, 128], strides = [1, 1]} : vector<16x128xf32> to vector<1x128xf32>
    %108 = vector.extract_strided_slice %105 {offsets = [8, 0], sizes = [1, 128], strides = [1, 1]} : vector<16x128xf32> to vector<1x128xf32>
    %109 = tpu.concatenate %107, %108 in 0 : vector<1x128xf32>, vector<1x128xf32> -> vector<2x128xf32>
    %c0_60 = arith.constant 0 : index
    %c0_61 = arith.constant 0 : index
    %c0_62 = arith.constant 0 : index
    %110 = vector.load %arg7[%c0_60, %c0_61, %c0_62] : memref<8x128x64xbf16, #tpu.memory_space<vmem>>, vector<1x128x64xbf16>
    %111 = vector.shape_cast %110 : vector<1x128x64xbf16> to vector<128x64xbf16>
    %112 = arith.truncf %109 : vector<2x128xf32> to vector<2x128xbf16>
    %cst_63 = arith.constant dense<0.000000e+00> : vector<2x64xf32>
    %113 = tpu.matmul %112, %111, %cst_63 {dimension_numbers = #tpu.dot_dimension_numbers<[1], [0], [0], [1], [0, 0, 1, 1], [], []>} : vector<2x128xbf16>, vector<128x64xbf16>, vector<2x64xf32> -> vector<2x64xf32>
    %114 = arith.addf %106, %113 : vector<2x64xf32>
    %115 = vector.extract_strided_slice %105 {offsets = [1, 0], sizes = [1, 128], strides = [1, 1]} : vector<16x128xf32> to vector<1x128xf32>
    %116 = vector.extract_strided_slice %105 {offsets = [9, 0], sizes = [1, 128], strides = [1, 1]} : vector<16x128xf32> to vector<1x128xf32>
    %117 = tpu.concatenate %115, %116 in 0 : vector<1x128xf32>, vector<1x128xf32> -> vector<2x128xf32>
    %c1_64 = arith.constant 1 : index
    %c0_65 = arith.constant 0 : index
    %c0_66 = arith.constant 0 : index
    %118 = vector.load %arg7[%c1_64, %c0_65, %c0_66] : memref<8x128x64xbf16, #tpu.memory_space<vmem>>, vector<1x128x64xbf16>
    %119 = vector.shape_cast %118 : vector<1x128x64xbf16> to vector<128x64xbf16>
    %120 = arith.truncf %117 : vector<2x128xf32> to vector<2x128xbf16>
    %cst_67 = arith.constant dense<0.000000e+00> : vector<2x64xf32>
    %121 = tpu.matmul %120, %119, %cst_67 {dimension_numbers = #tpu.dot_dimension_numbers<[1], [0], [0], [1], [0, 0, 1, 1], [], []>} : vector<2x128xbf16>, vector<128x64xbf16>, vector<2x64xf32> -> vector<2x64xf32>
    %122 = arith.addf %114, %121 : vector<2x64xf32>
    %123 = vector.extract_strided_slice %105 {offsets = [2, 0], sizes = [1, 128], strides = [1, 1]} : vector<16x128xf32> to vector<1x128xf32>
    %124 = vector.extract_strided_slice %105 {offsets = [10, 0], sizes = [1, 128], strides = [1, 1]} : vector<16x128xf32> to vector<1x128xf32>
    %125 = tpu.concatenate %123, %124 in 0 : vector<1x128xf32>, vector<1x128xf32> -> vector<2x128xf32>
    %c2_68 = arith.constant 2 : index
    %c0_69 = arith.constant 0 : index
    %c0_70 = arith.constant 0 : index
    %126 = vector.load %arg7[%c2_68, %c0_69, %c0_70] : memref<8x128x64xbf16, #tpu.memory_space<vmem>>, vector<1x128x64xbf16>
    %127 = vector.shape_cast %126 : vector<1x128x64xbf16> to vector<128x64xbf16>
    %128 = arith.truncf %125 : vector<2x128xf32> to vector<2x128xbf16>
    %cst_71 = arith.constant dense<0.000000e+00> : vector<2x64xf32>
    %129 = tpu.matmul %128, %127, %cst_71 {dimension_numbers = #tpu.dot_dimension_numbers<[1], [0], [0], [1], [0, 0, 1, 1], [], []>} : vector<2x128xbf16>, vector<128x64xbf16>, vector<2x64xf32> -> vector<2x64xf32>
    %130 = arith.addf %122, %129 : vector<2x64xf32>
    %131 = vector.extract_strided_slice %105 {offsets = [3, 0], sizes = [1, 128], strides = [1, 1]} : vector<16x128xf32> to vector<1x128xf32>
    %132 = vector.extract_strided_slice %105 {offsets = [11, 0], sizes = [1, 128], strides = [1, 1]} : vector<16x128xf32> to vector<1x128xf32>
    %133 = tpu.concatenate %131, %132 in 0 : vector<1x128xf32>, vector<1x128xf32> -> vector<2x128xf32>
    %c3_72 = arith.constant 3 : index
    %c0_73 = arith.constant 0 : index
    %c0_74 = arith.constant 0 : index
    %134 = vector.load %arg7[%c3_72, %c0_73, %c0_74] : memref<8x128x64xbf16, #tpu.memory_space<vmem>>, vector<1x128x64xbf16>
    %135 = vector.shape_cast %134 : vector<1x128x64xbf16> to vector<128x64xbf16>
    %136 = arith.truncf %133 : vector<2x128xf32> to vector<2x128xbf16>
    %cst_75 = arith.constant dense<0.000000e+00> : vector<2x64xf32>
    %137 = tpu.matmul %136, %135, %cst_75 {dimension_numbers = #tpu.dot_dimension_numbers<[1], [0], [0], [1], [0, 0, 1, 1], [], []>} : vector<2x128xbf16>, vector<128x64xbf16>, vector<2x64xf32> -> vector<2x64xf32>
    %138 = arith.addf %130, %137 : vector<2x64xf32>
    %139 = vector.extract_strided_slice %105 {offsets = [4, 0], sizes = [1, 128], strides = [1, 1]} : vector<16x128xf32> to vector<1x128xf32>
    %140 = vector.extract_strided_slice %105 {offsets = [12, 0], sizes = [1, 128], strides = [1, 1]} : vector<16x128xf32> to vector<1x128xf32>
    %141 = tpu.concatenate %139, %140 in 0 : vector<1x128xf32>, vector<1x128xf32> -> vector<2x128xf32>
    %c4_76 = arith.constant 4 : index
    %c0_77 = arith.constant 0 : index
    %c0_78 = arith.constant 0 : index
    %142 = vector.load %arg7[%c4_76, %c0_77, %c0_78] : memref<8x128x64xbf16, #tpu.memory_space<vmem>>, vector<1x128x64xbf16>
    %143 = vector.shape_cast %142 : vector<1x128x64xbf16> to vector<128x64xbf16>
    %144 = arith.truncf %141 : vector<2x128xf32> to vector<2x128xbf16>
    %cst_79 = arith.constant dense<0.000000e+00> : vector<2x64xf32>
    %145 = tpu.matmul %144, %143, %cst_79 {dimension_numbers = #tpu.dot_dimension_numbers<[1], [0], [0], [1], [0, 0, 1, 1], [], []>} : vector<2x128xbf16>, vector<128x64xbf16>, vector<2x64xf32> -> vector<2x64xf32>
    %146 = arith.addf %138, %145 : vector<2x64xf32>
    %147 = vector.extract_strided_slice %105 {offsets = [5, 0], sizes = [1, 128], strides = [1, 1]} : vector<16x128xf32> to vector<1x128xf32>
    %148 = vector.extract_strided_slice %105 {offsets = [13, 0], sizes = [1, 128], strides = [1, 1]} : vector<16x128xf32> to vector<1x128xf32>
    %149 = tpu.concatenate %147, %148 in 0 : vector<1x128xf32>, vector<1x128xf32> -> vector<2x128xf32>
    %c5_80 = arith.constant 5 : index
    %c0_81 = arith.constant 0 : index
    %c0_82 = arith.constant 0 : index
    %150 = vector.load %arg7[%c5_80, %c0_81, %c0_82] : memref<8x128x64xbf16, #tpu.memory_space<vmem>>, vector<1x128x64xbf16>
    %151 = vector.shape_cast %150 : vector<1x128x64xbf16> to vector<128x64xbf16>
    %152 = arith.truncf %149 : vector<2x128xf32> to vector<2x128xbf16>
    %cst_83 = arith.constant dense<0.000000e+00> : vector<2x64xf32>
    %153 = tpu.matmul %152, %151, %cst_83 {dimension_numbers = #tpu.dot_dimension_numbers<[1], [0], [0], [1], [0, 0, 1, 1], [], []>} : vector<2x128xbf16>, vector<128x64xbf16>, vector<2x64xf32> -> vector<2x64xf32>
    %154 = arith.addf %146, %153 : vector<2x64xf32>
    %155 = vector.extract_strided_slice %105 {offsets = [6, 0], sizes = [1, 128], strides = [1, 1]} : vector<16x128xf32> to vector<1x128xf32>
    %156 = vector.extract_strided_slice %105 {offsets = [14, 0], sizes = [1, 128], strides = [1, 1]} : vector<16x128xf32> to vector<1x128xf32>
    %157 = tpu.concatenate %155, %156 in 0 : vector<1x128xf32>, vector<1x128xf32> -> vector<2x128xf32>
    %c6 = arith.constant 6 : index
    %c0_84 = arith.constant 0 : index
    %c0_85 = arith.constant 0 : index
    %158 = vector.load %arg7[%c6, %c0_84, %c0_85] : memref<8x128x64xbf16, #tpu.memory_space<vmem>>, vector<1x128x64xbf16>
    %159 = vector.shape_cast %158 : vector<1x128x64xbf16> to vector<128x64xbf16>
    %160 = arith.truncf %157 : vector<2x128xf32> to vector<2x128xbf16>
    %cst_86 = arith.constant dense<0.000000e+00> : vector<2x64xf32>
    %161 = tpu.matmul %160, %159, %cst_86 {dimension_numbers = #tpu.dot_dimension_numbers<[1], [0], [0], [1], [0, 0, 1, 1], [], []>} : vector<2x128xbf16>, vector<128x64xbf16>, vector<2x64xf32> -> vector<2x64xf32>
    %162 = arith.addf %154, %161 : vector<2x64xf32>
    %163 = vector.extract_strided_slice %105 {offsets = [7, 0], sizes = [1, 128], strides = [1, 1]} : vector<16x128xf32> to vector<1x128xf32>
    %164 = vector.extract_strided_slice %105 {offsets = [15, 0], sizes = [1, 128], strides = [1, 1]} : vector<16x128xf32> to vector<1x128xf32>
    %165 = tpu.concatenate %163, %164 in 0 : vector<1x128xf32>, vector<1x128xf32> -> vector<2x128xf32>
    %c7 = arith.constant 7 : index
    %c0_87 = arith.constant 0 : index
    %c0_88 = arith.constant 0 : index
    %166 = vector.load %arg7[%c7, %c0_87, %c0_88] : memref<8x128x64xbf16, #tpu.memory_space<vmem>>, vector<1x128x64xbf16>
    %167 = vector.shape_cast %166 : vector<1x128x64xbf16> to vector<128x64xbf16>
    %168 = arith.truncf %165 : vector<2x128xf32> to vector<2x128xbf16>
    %cst_89 = arith.constant dense<0.000000e+00> : vector<2x64xf32>
    %169 = tpu.matmul %168, %167, %cst_89 {dimension_numbers = #tpu.dot_dimension_numbers<[1], [0], [0], [1], [0, 0, 1, 1], [], []>} : vector<2x128xbf16>, vector<128x64xbf16>, vector<2x64xf32> -> vector<2x64xf32>
    %170 = arith.addf %162, %169 : vector<2x64xf32>
    %c0_90 = arith.constant 0 : index
    %c0_91 = arith.constant 0 : index
    %171 = vector.load %arg8[%c0_90, %c0_91] : memref<1x64xf32, #tpu.memory_space<vmem>>, vector<1x64xf32>
    %172 = vector.broadcast %171 : vector<1x64xf32> to vector<2x64xf32>
    %173 = arith.addf %170, %172 : vector<2x64xf32>
    %cst_92 = arith.constant 0.000000e+00 : f32
    %174 = vector.broadcast %cst_92 : f32 to vector<2x64xf32>
    %175 = arith.maximumf %173, %174 : vector<2x64xf32>
    %c0_93 = arith.constant 0 : index
    %c0_94 = arith.constant 0 : index
    %176 = vector.load %arg9[%c0_93, %c0_94] : memref<64x32xbf16, #tpu.memory_space<vmem>>, vector<64x32xbf16>
    %177 = arith.truncf %175 : vector<2x64xf32> to vector<2x64xbf16>
    %cst_95 = arith.constant dense<0.000000e+00> : vector<2x32xf32>
    %178 = tpu.matmul %177, %176, %cst_95 {dimension_numbers = #tpu.dot_dimension_numbers<[1], [0], [0], [1], [0, 0, 1, 1], [], []>} : vector<2x64xbf16>, vector<64x32xbf16>, vector<2x32xf32> -> vector<2x32xf32>
    %c0_96 = arith.constant 0 : index
    %c0_97 = arith.constant 0 : index
    %179 = vector.load %arg10[%c0_96, %c0_97] : memref<1x32xf32, #tpu.memory_space<vmem>>, vector<1x32xf32>
    %180 = vector.broadcast %179 : vector<1x32xf32> to vector<2x32xf32>
    %181 = arith.addf %178, %180 : vector<2x32xf32>
    %cst_98 = arith.constant 0.000000e+00 : f32
    %182 = vector.broadcast %cst_98 : f32 to vector<2x32xf32>
    %183 = arith.maximumf %181, %182 : vector<2x32xf32>
    %c0_99 = arith.constant 0 : index
    %c0_100 = arith.constant 0 : index
    %184 = vector.load %arg11[%c0_99, %c0_100] : memref<32x2xbf16, #tpu.memory_space<vmem>>, vector<32x2xbf16>
    %185 = arith.truncf %183 : vector<2x32xf32> to vector<2x32xbf16>
    %cst_101 = arith.constant dense<0.000000e+00> : vector<2x2xf32>
    %186 = tpu.matmul %185, %184, %cst_101 {dimension_numbers = #tpu.dot_dimension_numbers<[1], [0], [0], [1], [0, 0, 1, 1], [], []>} : vector<2x32xbf16>, vector<32x2xbf16>, vector<2x2xf32> -> vector<2x2xf32>
    %c0_102 = arith.constant 0 : index
    %c0_103 = arith.constant 0 : index
    %187 = vector.load %arg12[%c0_102, %c0_103] : memref<1x2xf32, #tpu.memory_space<vmem>>, vector<1x2xf32>
    %188 = vector.broadcast %187 : vector<1x2xf32> to vector<2x2xf32>
    %189 = arith.addf %186, %188 : vector<2x2xf32>
    %cst_104 = arith.constant 0.000000e+00 : f32
    %190 = vector.broadcast %cst_104 : f32 to vector<2x2xf32>
    %191 = arith.subf %190, %189 : vector<2x2xf32>
    %192 = math.exp %191 : vector<2x2xf32>
    %cst_105 = arith.constant 1.000000e+00 : f32
    %193 = vector.broadcast %cst_105 : f32 to vector<2x2xf32>
    %194 = arith.addf %193, %192 : vector<2x2xf32>
    %195 = tpu.reciprocal %194 {approx = true} : vector<2x2xf32> -> vector<2x2xf32>
    %cst_106 = arith.constant 0.000000e+00 : f32
    %196 = vector.broadcast %cst_106 : f32 to vector<8x128xf32>
    %197 = vector.extract_strided_slice %105 {offsets = [0, 0], sizes = [2, 128], strides = [1, 1]} : vector<16x128xf32> to vector<2x128xf32>
    %198 = vector.extract_strided_slice %105 {offsets = [4, 0], sizes = [2, 128], strides = [1, 1]} : vector<16x128xf32> to vector<2x128xf32>
    %199 = vector.extract_strided_slice %105 {offsets = [8, 0], sizes = [2, 128], strides = [1, 1]} : vector<16x128xf32> to vector<2x128xf32>
    %200 = vector.extract_strided_slice %105 {offsets = [12, 0], sizes = [2, 128], strides = [1, 1]} : vector<16x128xf32> to vector<2x128xf32>
    %201 = tpu.concatenate %197, %198, %199, %200 in 0 : vector<2x128xf32>, vector<2x128xf32>, vector<2x128xf32>, vector<2x128xf32> -> vector<8x128xf32>
    %c0_107 = arith.constant 0 : index
    %c0_108 = arith.constant 0 : index
    %c0_109 = arith.constant 0 : index
    %202 = vector.load %arg5[%c0_107, %c0_108, %c0_109] : memref<3x128x128xbf16, #tpu.memory_space<vmem>>, vector<1x128x128xbf16>
    %203 = vector.shape_cast %202 : vector<1x128x128xbf16> to vector<128x128xbf16>
    %204 = arith.truncf %201 : vector<8x128xf32> to vector<8x128xbf16>
    %cst_110 = arith.constant dense<0.000000e+00> : vector<8x128xf32>
    %205 = tpu.matmul %204, %203, %cst_110 {dimension_numbers = #tpu.dot_dimension_numbers<[1], [0], [0], [1], [0, 0, 1, 1], [], []>} : vector<8x128xbf16>, vector<128x128xbf16>, vector<8x128xf32> -> vector<8x128xf32>
    %206 = arith.addf %196, %205 : vector<8x128xf32>
    %207 = vector.extract_strided_slice %105 {offsets = [1, 0], sizes = [2, 128], strides = [1, 1]} : vector<16x128xf32> to vector<2x128xf32>
    %208 = vector.extract_strided_slice %105 {offsets = [5, 0], sizes = [2, 128], strides = [1, 1]} : vector<16x128xf32> to vector<2x128xf32>
    %209 = vector.extract_strided_slice %105 {offsets = [9, 0], sizes = [2, 128], strides = [1, 1]} : vector<16x128xf32> to vector<2x128xf32>
    %210 = vector.extract_strided_slice %105 {offsets = [13, 0], sizes = [2, 128], strides = [1, 1]} : vector<16x128xf32> to vector<2x128xf32>
    %211 = tpu.concatenate %207, %208, %209, %210 in 0 : vector<2x128xf32>, vector<2x128xf32>, vector<2x128xf32>, vector<2x128xf32> -> vector<8x128xf32>
    %c1_111 = arith.constant 1 : index
    %c0_112 = arith.constant 0 : index
    %c0_113 = arith.constant 0 : index
    %212 = vector.load %arg5[%c1_111, %c0_112, %c0_113] : memref<3x128x128xbf16, #tpu.memory_space<vmem>>, vector<1x128x128xbf16>
    %213 = vector.shape_cast %212 : vector<1x128x128xbf16> to vector<128x128xbf16>
    %214 = arith.truncf %211 : vector<8x128xf32> to vector<8x128xbf16>
    %cst_114 = arith.constant dense<0.000000e+00> : vector<8x128xf32>
    %215 = tpu.matmul %214, %213, %cst_114 {dimension_numbers = #tpu.dot_dimension_numbers<[1], [0], [0], [1], [0, 0, 1, 1], [], []>} : vector<8x128xbf16>, vector<128x128xbf16>, vector<8x128xf32> -> vector<8x128xf32>
    %216 = arith.addf %206, %215 : vector<8x128xf32>
    %217 = vector.extract_strided_slice %105 {offsets = [2, 0], sizes = [2, 128], strides = [1, 1]} : vector<16x128xf32> to vector<2x128xf32>
    %218 = vector.extract_strided_slice %105 {offsets = [6, 0], sizes = [2, 128], strides = [1, 1]} : vector<16x128xf32> to vector<2x128xf32>
    %219 = vector.extract_strided_slice %105 {offsets = [10, 0], sizes = [2, 128], strides = [1, 1]} : vector<16x128xf32> to vector<2x128xf32>
    %220 = vector.extract_strided_slice %105 {offsets = [14, 0], sizes = [2, 128], strides = [1, 1]} : vector<16x128xf32> to vector<2x128xf32>
    %221 = tpu.concatenate %217, %218, %219, %220 in 0 : vector<2x128xf32>, vector<2x128xf32>, vector<2x128xf32>, vector<2x128xf32> -> vector<8x128xf32>
    %c2_115 = arith.constant 2 : index
    %c0_116 = arith.constant 0 : index
    %c0_117 = arith.constant 0 : index
    %222 = vector.load %arg5[%c2_115, %c0_116, %c0_117] : memref<3x128x128xbf16, #tpu.memory_space<vmem>>, vector<1x128x128xbf16>
    %223 = vector.shape_cast %222 : vector<1x128x128xbf16> to vector<128x128xbf16>
    %224 = arith.truncf %221 : vector<8x128xf32> to vector<8x128xbf16>
    %cst_118 = arith.constant dense<0.000000e+00> : vector<8x128xf32>
    %225 = tpu.matmul %224, %223, %cst_118 {dimension_numbers = #tpu.dot_dimension_numbers<[1], [0], [0], [1], [0, 0, 1, 1], [], []>} : vector<8x128xbf16>, vector<128x128xbf16>, vector<8x128xf32> -> vector<8x128xf32>
    %226 = arith.addf %216, %225 : vector<8x128xf32>
    %c0_119 = arith.constant 0 : index
    %c0_120 = arith.constant 0 : index
    %227 = vector.load %arg6[%c0_119, %c0_120] : memref<1x128xf32, #tpu.memory_space<vmem>>, vector<1x128xf32>
    %228 = vector.broadcast %227 : vector<1x128xf32> to vector<8x128xf32>
    %229 = arith.addf %226, %228 : vector<8x128xf32>
    %cst_121 = arith.constant 0.000000e+00 : f32
    %230 = vector.broadcast %cst_121 : f32 to vector<8x128xf32>
    %231 = arith.maximumf %229, %230 : vector<8x128xf32>
    %cst_122 = arith.constant 0.000000e+00 : f32
    %232 = vector.broadcast %cst_122 : f32 to vector<4x128xf32>
    %233 = vector.extract_strided_slice %231 {offsets = [0, 0], sizes = [1, 128], strides = [1, 1]} : vector<8x128xf32> to vector<1x128xf32>
    %234 = vector.extract_strided_slice %231 {offsets = [2, 0], sizes = [1, 128], strides = [1, 1]} : vector<8x128xf32> to vector<1x128xf32>
    %235 = vector.extract_strided_slice %231 {offsets = [4, 0], sizes = [1, 128], strides = [1, 1]} : vector<8x128xf32> to vector<1x128xf32>
    %236 = vector.extract_strided_slice %231 {offsets = [6, 0], sizes = [1, 128], strides = [1, 1]} : vector<8x128xf32> to vector<1x128xf32>
    %237 = tpu.concatenate %233, %234, %235, %236 in 0 : vector<1x128xf32>, vector<1x128xf32>, vector<1x128xf32>, vector<1x128xf32> -> vector<4x128xf32>
    %c0_123 = arith.constant 0 : index
    %c0_124 = arith.constant 0 : index
    %c0_125 = arith.constant 0 : index
    %238 = vector.load %arg13[%c0_123, %c0_124, %c0_125] : memref<2x128x128xbf16, #tpu.memory_space<vmem>>, vector<1x128x128xbf16>
    %239 = vector.shape_cast %238 : vector<1x128x128xbf16> to vector<128x128xbf16>
    %240 = arith.truncf %237 : vector<4x128xf32> to vector<4x128xbf16>
    %cst_126 = arith.constant dense<0.000000e+00> : vector<4x128xf32>
    %241 = tpu.matmul %240, %239, %cst_126 {dimension_numbers = #tpu.dot_dimension_numbers<[1], [0], [0], [1], [0, 0, 1, 1], [], []>} : vector<4x128xbf16>, vector<128x128xbf16>, vector<4x128xf32> -> vector<4x128xf32>
    %242 = arith.addf %232, %241 : vector<4x128xf32>
    %243 = vector.extract_strided_slice %231 {offsets = [1, 0], sizes = [1, 128], strides = [1, 1]} : vector<8x128xf32> to vector<1x128xf32>
    %244 = vector.extract_strided_slice %231 {offsets = [3, 0], sizes = [1, 128], strides = [1, 1]} : vector<8x128xf32> to vector<1x128xf32>
    %245 = vector.extract_strided_slice %231 {offsets = [5, 0], sizes = [1, 128], strides = [1, 1]} : vector<8x128xf32> to vector<1x128xf32>
    %246 = vector.extract_strided_slice %231 {offsets = [7, 0], sizes = [1, 128], strides = [1, 1]} : vector<8x128xf32> to vector<1x128xf32>
    %247 = tpu.concatenate %243, %244, %245, %246 in 0 : vector<1x128xf32>, vector<1x128xf32>, vector<1x128xf32>, vector<1x128xf32> -> vector<4x128xf32>
    %c1_127 = arith.constant 1 : index
    %c0_128 = arith.constant 0 : index
    %c0_129 = arith.constant 0 : index
    %248 = vector.load %arg13[%c1_127, %c0_128, %c0_129] : memref<2x128x128xbf16, #tpu.memory_space<vmem>>, vector<1x128x128xbf16>
    %249 = vector.shape_cast %248 : vector<1x128x128xbf16> to vector<128x128xbf16>
    %250 = arith.truncf %247 : vector<4x128xf32> to vector<4x128xbf16>
    %cst_130 = arith.constant dense<0.000000e+00> : vector<4x128xf32>
    %251 = tpu.matmul %250, %249, %cst_130 {dimension_numbers = #tpu.dot_dimension_numbers<[1], [0], [0], [1], [0, 0, 1, 1], [], []>} : vector<4x128xbf16>, vector<128x128xbf16>, vector<4x128xf32> -> vector<4x128xf32>
    %252 = arith.addf %242, %251 : vector<4x128xf32>
    %c0_131 = arith.constant 0 : index
    %c0_132 = arith.constant 0 : index
    %253 = vector.load %arg14[%c0_131, %c0_132] : memref<1x128xf32, #tpu.memory_space<vmem>>, vector<1x128xf32>
    %254 = vector.broadcast %253 : vector<1x128xf32> to vector<4x128xf32>
    %255 = arith.addf %252, %254 : vector<4x128xf32>
    %cst_133 = arith.constant 0.000000e+00 : f32
    %256 = vector.broadcast %cst_133 : f32 to vector<4x128xf32>
    %257 = arith.maximumf %255, %256 : vector<4x128xf32>
    %c0_134 = arith.constant 0 : index
    %c0_135 = arith.constant 0 : index
    %258 = vector.load %arg15[%c0_134, %c0_135] : memref<128x10xbf16, #tpu.memory_space<vmem>>, vector<128x10xbf16>
    %259 = arith.truncf %257 : vector<4x128xf32> to vector<4x128xbf16>
    %cst_136 = arith.constant dense<0.000000e+00> : vector<4x10xf32>
    %260 = tpu.matmul %259, %258, %cst_136 {dimension_numbers = #tpu.dot_dimension_numbers<[1], [0], [0], [1], [0, 0, 1, 1], [], []>} : vector<4x128xbf16>, vector<128x10xbf16>, vector<4x10xf32> -> vector<4x10xf32>
    %c0_137 = arith.constant 0 : index
    %c0_138 = arith.constant 0 : index
    %261 = vector.load %arg16[%c0_137, %c0_138] : memref<1x10xf32, #tpu.memory_space<vmem>>, vector<1x10xf32>
    %262 = vector.broadcast %261 : vector<1x10xf32> to vector<4x10xf32>
    %263 = arith.addf %260, %262 : vector<4x10xf32>
    %264 = vector.extract_strided_slice %263 {offsets = [1, 0], sizes = [1, 10], strides = [1, 1]} : vector<4x10xf32> to vector<1x10xf32>
    %265 = vector.extract_strided_slice %263 {offsets = [3, 0], sizes = [1, 10], strides = [1, 1]} : vector<4x10xf32> to vector<1x10xf32>
    %266 = tpu.concatenate %264, %265 in 0 : vector<1x10xf32>, vector<1x10xf32> -> vector<2x10xf32>
    %267 = vector.extract_strided_slice %263 {offsets = [0, 0], sizes = [1, 10], strides = [1, 1]} : vector<4x10xf32> to vector<1x10xf32>
    %268 = vector.extract_strided_slice %263 {offsets = [2, 0], sizes = [1, 10], strides = [1, 1]} : vector<4x10xf32> to vector<1x10xf32>
    %269 = tpu.concatenate %267, %268 in 0 : vector<1x10xf32>, vector<1x10xf32> -> vector<2x10xf32>
    %cst_139 = arith.constant 0.000000e+00 : f32
    %270 = vector.broadcast %cst_139 : f32 to vector<2x106xf32>
    %271 = tpu.concatenate %195, %266, %269, %270 in 1 : vector<2x2xf32>, vector<2x10xf32>, vector<2x10xf32>, vector<2x106xf32> -> vector<2x128xf32>
    %c0_140 = arith.constant 0 : index
    %c0_141 = arith.constant 0 : index
    %272 = vector.load %arg17[%c0_140, %c0_141] : memref<2x128xf32, #tpu.memory_space<vmem>>, vector<2x128xf32>
    tpu.vector_store %arg17[%c0_140, %c0_141], %271 {strides = array<i32>} : memref<2x128xf32, #tpu.memory_space<vmem>>, vector<2x128xf32>,
    return
  }
}

</mosaic_0001>

<bundles_post_ra>
// kernel: tile.18
= control target key start
LH: loop header
LB: loop body
LE: loop exit
PB: predicated region body
PF: predicated region fallthrough
CT: control target
= control target key end

     0   :  { %s28_s0 = inlined_call_operand.vmem [shape: f32[32], index: 0, kind: input, shape index: {}]   ;;  %s29_s1 = inlined_call_operand.vmem [shape: f32[12,32], index: 1, kind: output, shape index: {}]  }
   0x1   :  { %v4_v0 = vld [vmem:[%s28_s0] ss:$0 sm:$0xff] }
   0x2   :  { %5 = vst [vmem:[%s29_s1] sm:$0xff] %v4_v0  ;;  %8 = vst [vmem:[%s29_s1 + $0x8] sm:$0xff] %v4_v0 }

// kernel: tile.19
= control target key start
LH: loop header
LB: loop body
LE: loop exit
PB: predicated region body
PF: predicated region fallthrough
CT: control target
= control target key end

     0   :  { %s49_s8 = smov 96   ;;  %vm3_vm0 = vcmask 261120   ;;  %s51_s15 = smov 64   ;;  %vm9_vm1 = vcmask 1048320   ;;  %vm15_vm2 = vcmask 785920   ;;  %vm21_vm3 = vcmask 523520   ;;  %s83_s0 = inlined_call_operand.vmem [shape: f32[12,32], index: 0, kind: input, shape index: {}]   ;;  %s84_s1 = inlined_call_operand.vmem [shape: f32[1,384], index: 1, kind: output, shape index: {}]  }
   0x1   :  { %v41_v0 = vld [vmem:[%s83_s0 + $0x3] ss:$4 sm:$0x7]   ;;  %v42_v1 = vld [vmem:[%s83_s0 + $0x2] ss:$4 sm:$0x7]  }
   0x2   :  { %7 = vrot.lane.b32.xlu0 %v41_v0, %s49_s8  ;;  %v43_v2 = vld [vmem:[%s83_s0 + $0x1] ss:$4 sm:$0x7]   ;;  %v2_v3 = vld [vmem:[%s83_s0] ss:$4 sm:$0x7]  }
   0x3   :  { %s50_s0 = smov 32   ;;  %4 = vst.msk [vmem:[#allocation0] ss:$8 sm:$0x7] %vm3_vm0, %v2_v3  }
   0x4   :  { %19 = vrot.lane.b32.xlu1 %v43_v2, %s50_s0 }
   0x6   :  { %13 = vrot.lane.b32.xlu0 %v42_v1, %s51_s15 }
  0x74   :  { %v8_v4 = vpop.permute.xlu0 %7  }
  0x75   :  { %10 = vst.msk [vmem:[#allocation0] ss:$8 sm:$0x7] %vm9_vm1, %v8_v4  }
  0x76   :  { %v20_v5 = vpop.permute.xlu1 %19  }
  0x78   :  { %v14_v6 = vpop.permute.xlu0 %13  }
  0x79   :  { %16 = vst.msk [vmem:[#allocation0] ss:$8 sm:$0x7] %vm15_vm2, %v14_v6  }
  0x7a   :  { %22 = vst.msk [vmem:[#allocation0] ss:$8 sm:$0x7] %vm21_vm3, %v20_v5  }
  0x81   :  { %v26_v7 = vld [vmem:[#allocation0] sm:$0x1]  ;;  %v30_v8 = vld [vmem:[#allocation0 + $0x8] sm:$0x1]  ;;  %v35_v9 = vld [vmem:[#allocation0 + $0x10] sm:$0x1] }
  0x82   :  { %28 = vst [vmem:[%s84_s1] sm:$0x1] %v26_v7  ;;  %44 = vst [vmem:[%s84_s1 + $0x1] sm:$0x1] %v30_v8 }
  0x83   :  { %45 = vst [vmem:[%s84_s1 + $0x2] sm:$0x1] %v35_v9 }

// kernel: tile.23
= control target key start
LH: loop header
LB: loop body
LE: loop exit
PB: predicated region body
PF: predicated region fallthrough
CT: control target
= control target key end

     0   :  { %s22_s0 = inlined_call_operand.vmem [shape: f32[32], index: 0, kind: input, shape index: {}]   ;;  %s23_s1 = inlined_call_operand.vmem [shape: f32[4,32], index: 1, kind: output, shape index: {}]  }
   0x1   :  { %v4_v0 = vld [vmem:[%s22_s0] ss:$0 sm:$0xff] }
   0x2   :  { %5 = vst [vmem:[%s23_s1] sm:$0xf] %v4_v0 }

// kernel: tile.24
= control target key start
LH: loop header
LB: loop body
LE: loop exit
PB: predicated region body
PF: predicated region fallthrough
CT: control target
= control target key end

     0   :  { %vm7_vm0 = vcmask 261120   ;;  %s37_s8 = smov 32   ;;  %s38_s9 = smov 64   ;;  %vm13_vm1 = vcmask 1048320   ;;  %vm19_vm2 = vcmask 785920   ;;  %vm25_vm3 = vcmask 523520   ;;  %s55_s0 = inlined_call_operand.vmem [shape: f32[4,32], index: 0, kind: input, shape index: {}]   ;;  %s56_s1 = inlined_call_operand.vmem [shape: f32[1,128], index: 1, kind: output, shape index: {}]  }
   0x1   :  { %v4_v0 = vld [vmem:[%s55_s0] sm:$0xf]  ;;  %s36_s0 = smov 96  }
   0x2   :  { %5 = vst [vmem:[#allocation1] sm:$0xf] %v4_v0 }
   0x9   :  { %v10_v1 = vld [vmem:[#allocation1 + $0x3] sm:$0x1]   ;;  %v22_v2 = vld [vmem:[#allocation1 + $0x1] sm:$0x1]   ;;  %v6_v3 = vld [vmem:[#allocation1] sm:$0x1]  }
   0xa   :  { %11 = vrot.lane.b32.xlu0 %v10_v1, %s36_s0  ;;  %23 = vrot.lane.b32.xlu1 %v22_v2, %s37_s8  ;;  %v16_v4 = vld [vmem:[#allocation1 + $0x2] sm:$0x1]   ;;  %8 = vst.msk [vmem:[#allocation0] sm:$0x1] %vm7_vm0, %v6_v3  }
   0xe   :  { %17 = vrot.lane.b32.xlu0 %v16_v4, %s38_s9 }
  0x7c   :  { %v12_v5 = vpop.permute.xlu0 %11   ;;  %v24_v6 = vpop.permute.xlu1 %23  }
  0x7d   :  { %14 = vst.msk [vmem:[#allocation0] sm:$0x1] %vm13_vm1, %v12_v5  }
  0x80   :  { %v18_v7 = vpop.permute.xlu0 %17  }
  0x81   :  { %20 = vst.msk [vmem:[#allocation0] sm:$0x1] %vm19_vm2, %v18_v7  }
  0x82   :  { %26 = vst.msk [vmem:[#allocation0] sm:$0x1] %vm25_vm3, %v24_v6  }
  0x89   :  { %v30_v8 = vld [vmem:[#allocation0] sm:$0x1] }
  0x8a   :  { %32 = vst [vmem:[%s56_s1] sm:$0x1] %v30_v8 }

// kernel: tile.29
= control target key start
LH: loop header
LB: loop body
LE: loop exit
PB: predicated region body
PF: predicated region fallthrough
CT: control target
= control target key end

     0   :  { %vm7_vm0 = vcmask 523264   ;;  %vm13_vm1 = vcmask 1048064   ;;  %s39_s0 = inlined_call_operand.vmem [shape: f32[2,64], index: 0, kind: input, shape index: {}]   ;;  %s40_s1 = inlined_call_operand.vmem [shape: f32[1,128], index: 1, kind: output, shape index: {}]  }
   0x1   :  { %v4_v0 = vld [vmem:[%s39_s0] sm:$0x3]  ;;  %s22_s0 = smov 64  }
   0x2   :  { %5 = vst [vmem:[#allocation1] sm:$0x3] %v4_v0 }
   0x9   :  { %v10_v1 = vld [vmem:[#allocation1 + $0x1] sm:$0x1]   ;;  %v6_v2 = vld [vmem:[#allocation1] sm:$0x1]  }
   0xa   :  { %11 = vrot.lane.b32.xlu0 %v10_v1, %s22_s0  ;;  %8 = vst.msk [vmem:[#allocation0] sm:$0x1] %vm7_vm0, %v6_v2  }
  0x7c   :  { %v12_v3 = vpop.permute.xlu0 %11  }
  0x7d   :  { %14 = vst.msk [vmem:[#allocation0] sm:$0x1] %vm13_vm1, %v12_v3  }
  0x84   :  { %v18_v4 = vld [vmem:[#allocation0] sm:$0x1] }
  0x85   :  { %20 = vst [vmem:[%s40_s1] sm:$0x1] %v18_v4 }

// kernel: tile.28
= control target key start
LH: loop header
LB: loop body
LE: loop exit
PB: predicated region body
PF: predicated region fallthrough
CT: control target
= control target key end

     0   :  { %s22_s0 = inlined_call_operand.vmem [shape: f32[64], index: 0, kind: input, shape index: {}]   ;;  %s23_s1 = inlined_call_operand.vmem [shape: f32[2,64], index: 1, kind: output, shape index: {}]  }
   0x1   :  { %v4_v0 = vld [vmem:[%s22_s0] ss:$0 sm:$0xff] }
   0x2   :  { %5 = vst [vmem:[%s23_s1] sm:$0x3] %v4_v0 }

// kernel: class_aux_forward.1
= control target key start
LH: loop header
LB: loop body
LE: loop exit
PB: predicated region body
PF: predicated region fallthrough
CT: control target
= control target key end

     0   :  { %vm97_vm0 = vcmask 1046528   ;;  %v4422_v1 = vmov 0   ;;  %vm90_vm1 = vcmask 113664   ;;  %s4423_s24 = smov 96   ;;  %s4424_s27 = smov 64   ;;  %vm929_vm2 = vcmask 261120   ;;  %s5576_s1 = inlined_call_operand.vmem [shape: bf16[3,14,384], index: 1, kind: input, shape index: {}]   ;;  %s5577_s0 = inlined_call_operand.vmem [shape: f32[6,24,14], index: 0, kind: input, shape index: {}]   ;;  %s5578_s3 = inlined_call_operand.vmem [shape: bf16[3,192,128], index: 3, kind: input, shape index: {}]   ;;  %s5579_s2 = inlined_call_operand.vmem [shape: f32[1,384], index: 2, kind: input, shape index: {}]   ;;  %s5580_s7 = inlined_call_operand.vmem [shape: bf16[8,128,64], index: 7, kind: input, shape index: {}]   ;;  %s5581_s4 = inlined_call_operand.vmem [shape: f32[1,128], index: 4, kind: input, shape index: {}]   ;;  %s5582_s5 = inlined_call_operand.vmem [shape: bf16[3,128,128], index: 5, kind: input, shape index: {}]   ;;  %s5583_s9 = inlined_call_operand.vmem [shape: bf16[64,32], index: 9, kind: input, shape index: {}]   ;;  %s5584_s11 = inlined_call_operand.vmem [shape: bf16[32,2], index: 11, kind: input, shape index: {}]   ;;  %s5585_s8 = inlined_call_operand.vmem [shape: f32[1,64], index: 8, kind: input, shape index: {}]   ;;  %s5586_s10 = inlined_call_operand.vmem [shape: f32[1,32], index: 10, kind: input, shape index: {}]   ;;  %s5587_s13 = inlined_call_operand.vmem [shape: bf16[2,128,128], index: 13, kind: input, shape index: {}]   ;;  %s5588_s15 = inlined_call_operand.vmem [shape: bf16[128,10], index: 15, kind: input, shape index: {}]   ;;  %s5589_s6 = inlined_call_operand.vmem [shape: f32[1,128], index: 6, kind: input, shape index: {}]   ;;  %s5590_s14 = inlined_call_operand.vmem [shape: f32[1,128], index: 14, kind: input, shape index: {}]   ;;  %s5591_s16 = inlined_call_operand.vmem [shape: f32[1,10], index: 16, kind: input, shape index: {}]   ;;  %s5592_s12 = inlined_call_operand.vmem [shape: f32[1,2], index: 12, kind: input, shape index: {}]   ;;  %s5593_s17 = inlined_call_operand.vmem [shape: f32[2,128], index: 17, kind: output, shape index: {}]  }
   0x1   :  { %5596 = sst [smem:[#allocation2_spill]] %s5576_s1  ;;  %139 = vmatprep.mubr.bf16.mxu0 %v4422_v1  ;;  %v4264_v46 = vld [vmem:[%s5578_s3 + $0x60] sm:$0xff]   ;;  %v4266_v48 = vld [vmem:[%s5578_s3 + $0x68] sm:$0xff]   ;;  %v4268_v50 = vld [vmem:[%s5578_s3 + $0x70] sm:$0xff]   ;;  %s4425_s19 = smov 32   ;;  %vm933_vm3 = vcmask 523264  }
   0x2   :  { %5597 = sst [smem:[#allocation3_spill]] %s5577_s0  ;;  %s5598_s26 = sld [smem:[#allocation2_spill]]  ;;  %v4265_v47 = vld [vmem:[%s5578_s3] sm:$0xff]   ;;  %v4267_v49 = vld [vmem:[%s5578_s3 + $0x8] sm:$0xff]   ;;  %v4269_v51 = vld [vmem:[%s5578_s3 + $0x10] sm:$0xff]   ;;  %vm937_vm4 = vcmask 785408  }
   0x3   :  { %s5599_s29 = sld [smem:[#allocation3_spill]]  ;;  %vm1003_vm5 = vcmask 1043456   ;;  %vm1038_vm6 = vcmask 1044480   ;;  %vm1047_vm7 = vcmask 1042432   ;;  %vm984_vm8 = vcmask 1045504   ;;  %s4429_s28 = smov 2  }
   0x4   :  { %vm1325_vm9 = vcmask 1041408   ;;  %vm4427_vm10 = vmmov 0   ;;  %vm1495_vm11 = vcmask 1040384   ;;  %vm3247_vm12 = vcmask 15360  }
   0x5   :  { %vm3249_vm13 = vcmask 97280   ;;  %vm3251_vm14 = vcmask 179200  }
   0x8   :  { %v4252_v0 = vld [vmem:[%s5598_s26 + $0x1c] ss:$12 sps:$4 sm:$0x7f]   ;;  %v4254_v3 = vld [vmem:[%s5598_s26 + $0x20] ss:$12 sps:$4 sm:$0x7f]  }
   0x9   :  { %v3258_v2 = vld [vmem:[%s5599_s29 + $0x30] sm:$0xff]  ;;  %3268 = vmatprep.subr.msk.bf16.mxu0 %vm97_vm0, %v4252_v0  ;;  %v4255_v4 = vld [vmem:[%s5598_s26 + $0x18] ss:$12 sps:$4 sm:$0x7f]   ;;  %4198 = vmatprep.subr.msk.bf16.mxu1 %vm97_vm0, %v4254_v3  ;;  %v105_v8 = vsel %vm97_vm0, %v4254_v3, 0  ;;  %v58_v12 = vld [vmem:[%s5599_s29 + $0x8] sm:$0xff] }
   0xa   :  { %v3259_v5 = vld [vmem:[%s5599_s29 + $0x38] sm:$0xff]  ;;  %v3260_v6 = vld [vmem:[%s5599_s29 + $0x40] sm:$0xff]  ;;  %v99_v7 = vsel %vm97_vm0, %v4255_v4, 0  ;;  %3847 = vmatpush3.bf16.msra.mxu1 %v105_v8  ;;  %v4256_v13 = vld [vmem:[%s5598_s26 + $0x8] ss:$12 sps:$4 sm:$0x7f]  }
   0xb   :  { %v75_v9 = vpack.c.bf16 %v3259_v5, %v3258_v2  ;;  %v76_v10 = vpack.c.bf16 %v3260_v6, %v3260_v6  ;;  %v57_v11 = vld [vmem:[%s5599_s29] sm:$0xff]  ;;  %108 = vmatpush1.bf16.msra.mxu0 %v99_v7  ;;  %4199 = vmatprep.subr.msk.bf16.mxu1 %vm97_vm0, %v4256_v13  ;;  %v232_v16 = vsel %vm97_vm0, %v4256_v13, 0  ;;  %v59_v19 = vld [vmem:[%s5599_s29 + $0x10] sm:$0xff]  ;;  %v3282_v22 = vld [vmem:[%s5599_s29 + $0x68] sm:$0xff] }
   0xc   :  { %v64_v14 = vpack.c.bf16 %v58_v12, %v57_v11  ;;  %v4257_v15 = vld [vmem:[%s5598_s26 + $0x38] ss:$12 sps:$4 sm:$0x7f]   ;;  %v4260_v18 = vld [vmem:[%s5598_s26] ss:$12 sps:$4 sm:$0x7f]   ;;  %v65_v24 = vpack.c.bf16 %v59_v19, %v59_v19 }
   0xd   :  { %3848 = vmatprep.mubr.msk.bf16.mxu1 %vm90_vm1, %v75_v9  ;;  %v4258_v17 = vld [vmem:[%s5598_s26 + $0x4] ss:$12 sps:$4 sm:$0x7f]   ;;  %v226_v20 = vsel %vm97_vm0, %v4260_v18, 0  ;;  %v370_v25 = vsel %vm97_vm0, %v4257_v15, 0  ;;  %v3299_v31 = vld [vmem:[%s5599_s29 + $0x48] sm:$0xff] }
   0xe   :  { %3269 = vmatmul.mubr.msk.bf16.vlgmr.msra.gmra.mrb[0].mxu0 %vm90_vm1, %v75_v9  ;;  %3849 = vmatmul.mubr.msk.bf16.vlgmr.msra.gmra.mrb[0].mxu1 %vm90_vm1, %v76_v10  ;;  %v3281_v21 = vld [vmem:[%s5599_s29 + $0x60] sm:$0xff]  ;;  %v3283_v27 = vld [vmem:[%s5599_s29 + $0x70] sm:$0xff]  ;;  %v3301_v34 = vld [vmem:[%s5599_s29 + $0x58] sm:$0xff] }
   0xf   :  { %3853 = vmatpush3.bf16.msra.mxu1 %v232_v16  ;;  %149 = vmatprep.mubr.bf16.mxu0 %v4422_v1  ;;  %v4261_v23 = vld [vmem:[%s5598_s26 + $0x34] ss:$12 sps:$4 sm:$0x7f]   ;;  %v342_v26 = vpack.c.bf16 %v3282_v22, %v3281_v21  ;;  %v343_v28 = vpack.c.bf16 %v3283_v27, %v3283_v27  ;;  %v4263_v29 = vld [vmem:[%s5598_s26 + $0x30] ss:$12 sps:$4 sm:$0x7f]   ;;  %v526_v35 = vpack.c.bf16 %v3301_v34, %v3301_v34  ;;  %v482_v27 = vlaneseq }
  0x10   :  { %3854 = vmatprep.mubr.msk.bf16.mxu1 %vm90_vm1, %v64_v14  ;;  %4200 = vmatprep.subr.msk.bf16.mxu1 %vm97_vm0, %v4257_v15  ;;  %v364_v30 = vsel %vm97_vm0, %v4263_v29, 0  ;;  %v3300_v32 = vld [vmem:[%s5599_s29 + $0x50] sm:$0xff]  ;;  %v3296_v36 = vld [vmem:[%s5599_s29 + $0x18] sm:$0xff]  ;;  %v3297_v37 = vld [vmem:[%s5599_s29 + $0x20] sm:$0xff] }
  0x11   :  { %3276 = vmatprep.subr.msk.bf16.mxu0 %vm97_vm0, %v4258_v17  ;;  %v525_v33 = vpack.c.bf16 %v3300_v32, %v3299_v31  ;;  %v519_v38 = vpack.c.bf16 %v3297_v37, %v3296_v36  ;;  %v3298_v39 = vld [vmem:[%s5599_s29 + $0x28] sm:$0xff]  ;;  %v3312_v40 = vld [vmem:[%s5599_s29 + $0x78] sm:$0xff]  ;;  %v3313_v41 = vld [vmem:[%s5599_s29 + $0x80] sm:$0xff]  ;;  %v483_v36 = vshrl.u32 %v482_v27, 7 }
  0x12   :  { %235 = vmatpush1.bf16.msra.mxu0 %v226_v20  ;;  %v520_v42 = vpack.c.bf16 %v3298_v39, %v3298_v39  ;;  %v741_v43 = vpack.c.bf16 %v3313_v41, %v3312_v40  ;;  %v3314_v44 = vld [vmem:[%s5599_s29 + $0x88] sm:$0xff]  ;;  %v480_v41 = vld [vmem:[%s5579_s2] sm:$0x7] }
  0x13   :  { %3291 = vmatprep.subr.msk.bf16.mxu0 %vm97_vm0, %v4261_v23  ;;  %v742_v45 = vpack.c.bf16 %v3314_v44, %v3314_v44 }
  0x16   :  { %3270 = vmatmul.mubr.msk.bf16.gmra.mrb[4].mxu0 %vm90_vm1, %v76_v10  ;;  %3855 = vmatmul.mubr.msk.bf16.vlgmr.msra.gmra.mrb[4].mxu1 %vm90_vm1, %v65_v24 }
  0x17   :  { %3859 = vmatpush3.bf16.msra.mxu1 %v370_v25  ;;  %266 = vmatprep.mubr.bf16.mxu0 %v4422_v1 }
  0x18   :  { %3860 = vmatprep.mubr.msk.bf16.mxu1 %vm90_vm1, %v342_v26  ;;  %3302 = vmatprep.subr.msk.bf16.mxu1 %vm97_vm0, %v4252_v0 }
  0x1e   :  { %3277 = vmatmul.mubr.msk.bf16.vlgmr.msra.gmra.mrb[0].mxu0 %vm90_vm1, %v64_v14  ;;  %3861 = vmatmul.mubr.msk.bf16.vlgmr.msra.gmra.mrb[8].mxu1 %vm90_vm1, %v343_v28 }
  0x1f   :  { %534 = vmatpush1.bf16.msra.mxu1 %v99_v7  ;;  %276 = vmatprep.mubr.bf16.mxu0 %v4422_v1 }
  0x20   :  { %565 = vmatprep.mubr.bf16.mxu1 %v4422_v1  ;;  %4201 = vmatprep.subr.msk.bf16.mxu1 %vm97_vm0, %v4254_v3 }
  0x21   :  { %373 = vmatpush1.bf16.msra.mxu0 %v364_v30 }
  0x22   :  { %4202 = vmatprep.subr.msk.bf16.mxu0 %vm97_vm0, %v4256_v13 }
  0x26   :  { %3278 = vmatmul.mubr.msk.bf16.gmra.mrb[8].mxu0 %vm90_vm1, %v65_v24  ;;  %3303 = vmatmul.mubr.msk.bf16.vlgmr.msra.gmra.mrb[12].mxu1 %vm90_vm1, %v525_v33 }
  0x27   :  { %3865 = vmatpush3.bf16.msra.mxu1 %v105_v8  ;;  %404 = vmatprep.mubr.bf16.mxu0 %v4422_v1 }
  0x28   :  { %575 = vmatprep.mubr.bf16.mxu1 %v4422_v1  ;;  %3307 = vmatprep.subr.msk.bf16.mxu1 %vm97_vm0, %v4258_v17 }
  0x2e   :  { %3292 = vmatmul.mubr.msk.bf16.vlgmr.msra.gmra.mrb[0].mxu0 %vm90_vm1, %v342_v26  ;;  %3304 = vmatmul.mubr.msk.bf16.gmra.mrb[16].mxu1 %vm90_vm1, %v526_v35 }
  0x2f   :  { %414 = vmatprep.mubr.bf16.mxu0 %v4422_v1  ;;  %3866 = vmatprep.mubr.msk.bf16.mxu1 %vm90_vm1, %v525_v33 }
  0x30   :  { %3871 = vmatpush3.bf16.msra.mxu0 %v232_v16 }
  0x31   :  { %4203 = vmatprep.subr.msk.bf16.mxu0 %vm97_vm0, %v4257_v15 }
  0x36   :  { %3293 = vmatmul.mubr.msk.bf16.gmra.mrb[12].mxu0 %vm90_vm1, %v343_v28  ;;  %3867 = vmatmul.mubr.msk.bf16.vlgmr.msra.gmra.mrb[20].mxu1 %vm90_vm1, %v526_v35 }
  0x37   :  { %639 = vmatpush1.bf16.msra.mxu1 %v226_v20  ;;  %670 = vmatprep.mubr.bf16.mxu1 %v4422_v1 }
  0x38   :  { %3872 = vmatprep.mubr.msk.bf16.mxu0 %vm90_vm1, %v519_v38  ;;  %3315 = vmatprep.subr.msk.bf16.mxu1 %vm97_vm0, %v4261_v23 }
  0x3e   :  { %3308 = vmatmul.mubr.msk.bf16.vlgmr.msra.gmra.mrb[12].mxu1 %vm90_vm1, %v519_v38  ;;  %3873 = vmatmul.mubr.msk.bf16.vlgmr.msra.gmra.mrb[16].mxu0 %vm90_vm1, %v520_v42  ;;  %v492_v38 = vsub.s32 2, %v483_v36 }
  0x3f   :  { %750 = vmatpush1.bf16.msra.mxu1 %v364_v30  ;;  %3877 = vmatpush3.bf16.msra.mxu0 %v370_v25 }
  0x40   :  { %680 = vmatprep.mubr.bf16.mxu1 %v4422_v1  ;;  %3878 = vmatprep.mubr.msk.bf16.mxu0 %vm90_vm1, %v741_v43 }
  0x41   :  { %1166 = vmatprep.subr.bf16.mxu0 %v4422_v1  ;;  %1282 = vmatprep.subr.bf16.mxu1 %v4422_v1 }
  0x46   :  { %3309 = vmatmul.mubr.msk.bf16.gmra.mrb[24].mxu1 %vm90_vm1, %v520_v42  ;;  %3879 = vmatmul.mubr.msk.bf16.vlgmr.msra.gmra.mrb[20].mxu0 %vm90_vm1, %v742_v45 }
  0x47   :  { %781 = vmatprep.mubr.bf16.mxu1 %v4422_v1  ;;  %1167 = vmatpush1.bf16.msra.mxu0 %v4264_v46  ;;  %v493_v46 = vrot.slane %v480_v41, %v492_v38 }
  0x48   :  { %1168 = vmatprep.subr.bf16.mxu0 %v4422_v1 }
  0x4b   :  { %1169 = vmatpush1.bf16.msra.mxu0 %v4266_v48  ;;  %v488_v48 = vsub.s32 1, %v483_v36 }
  0x4c   :  { %1170 = vmatprep.subr.bf16.mxu0 %v4422_v1 }
  0x4e   :  { %3316 = vmatmul.mubr.msk.bf16.vlgmr.msra.gmra.mrb[12].mxu1 %vm90_vm1, %v741_v43 }
  0x4f   :  { %791 = vmatprep.mubr.bf16.mxu1 %v4422_v1  ;;  %1283 = vmatpush1.bf16.msra.mxu1 %v4265_v47  ;;  %v484_v47 = vsub.s32 0, %v483_v36 }
  0x50   :  { %1284 = vmatprep.subr.bf16.mxu1 %v4422_v1  ;;  %1171 = vmatpush1.bf16.msra.mxu0 %v4268_v50 }
  0x51   :  { %1172 = vmatprep.subr.bf16.mxu0 %v4422_v1 }
  0x53   :  { %1285 = vmatpush1.bf16.msra.mxu1 %v4267_v49 }
  0x54   :  { %1286 = vmatprep.subr.bf16.mxu1 %v4422_v1 }
  0x56   :  { %3317 = vmatmul.mubr.msk.bf16.gmra.mrb[28].mxu1 %vm90_vm1, %v742_v45 }
  0x57   :  { %1287 = vmatpush1.bf16.msra.mxu1 %v4269_v51  ;;  %v4270_v51 = vld [vmem:[%s5578_s3 + $0x78] sm:$0xff]  }
  0x58   :  { %1288 = vmatprep.subr.bf16.mxu1 %v4422_v1  ;;  %1173 = vmatpush1.bf16.msra.mxu0 %v4270_v51 }
  0x59   :  { %1174 = vmatprep.subr.bf16.mxu0 %v4422_v1 }
  0xe1   :  { %v3850_v52 = vpop.f32.mrb[0].mxu1 }
  0xe2   :  { %v192_v53 = vpop.f32.mrb[1].mxu1 }
  0xe3   :  { %v3851_v54 = vpop.f32.mrb[2].mxu1 }
  0xe4   :  { %v195_v55 = vpop.f32.mrb[3].mxu1 }
  0xe9   :  { %v3856_v56 = vpop.f32.mrb[4].mxu1  ;;  %v151_v57 = vpop.f32.mrb[4].mxu0 }
  0xea   :  { %v328_v58 = vadd.f32 %v3856_v56, %v3850_v52  ;;  %v319_v59 = vpop.f32.mrb[5].mxu1  ;;  %v153_v60 = vpop.f32.mrb[5].mxu0 }
  0xeb   :  { %v320_v61 = vadd.f32 %v319_v59, %v192_v53  ;;  %v3857_v62 = vpop.f32.mrb[6].mxu1  ;;  %v155_v63 = vpop.f32.mrb[6].mxu0 }
  0xec   :  { %v322_v0 = vpop.f32.mrb[7].mxu1  ;;  %v156_v2 = vpop.f32.mrb[7].mxu0  ;;  %v4706_v63 = vrot.slane %v480_v41, %v484_v47 }
  0xed   :  { %v323_v3 = vadd.f32 %v322_v0, %v195_v55 }
  0xf1   :  { %v3862_v4 = vpop.f32.mrb[8].mxu1 }
  0xf2   :  { %v479_v5 = vadd.f32 %v3862_v4, %v328_v58  ;;  %v457_v6 = vpop.f32.mrb[9].mxu1 }
  0xf3   :  { %v473_v7 = vadd.f32 %v457_v6, %v320_v61  ;;  %v3863_v8 = vpop.f32.mrb[10].mxu1 }
  0xf4   :  { %v460_v9 = vpop.f32.mrb[11].mxu1  ;;  %v505_v52 = vadd.f32 %v493_v46, %v479_v5  ;;  %v4709_v5 = vrot.slane %v480_v41, %v488_v48  ;;  %v4276_v41 = vld [vmem:[%s5578_s3 + $0x90] sm:$0xff]  }
  0xf5   :  { %v476_v10 = vadd.f32 %v460_v9, %v323_v3  ;;  %v499_v58 = vadd.f32 %v493_v46, %v473_v7  ;;  %v4272_v7 = vld [vmem:[%s5578_s3 + $0x80] sm:$0xff]  }
  0xf6   :  { %v514_v9 = vmax.f32 %v505_v52, 0.0  ;;  %1175 = vmatpush1.bf16.msra.mxu0 %v4272_v7  ;;  %v4278_v52 = vld [vmem:[%s5578_s3 + $0x98] sm:$0xff]  }
  0xf7   :  { %v502_v4 = vadd.f32 %v493_v46, %v476_v10  ;;  %1176 = vmatprep.subr.bf16.mxu0 %v4422_v1 }
  0xf9   :  { %v278_v11 = vpop.f32.mrb[8].mxu0 }
  0xfa   :  { %v279_v12 = vadd.f32 %v278_v11, %v151_v57  ;;  %v280_v13 = vpop.f32.mrb[9].mxu0  ;;  %v4271_v57 = vld [vmem:[%s5578_s3 + $0x18] sm:$0xff]  }
  0xfb   :  { %v281_v14 = vadd.f32 %v280_v13, %v153_v60  ;;  %v282_v15 = vpop.f32.mrb[10].mxu0  ;;  %1289 = vmatpush1.bf16.msra.mxu1 %v4271_v57  ;;  %v508_v13 = vmax.f32 %v499_v58, 0.0  ;;  %v4279_v58 = vld [vmem:[%s5578_s3 + $0x38] sm:$0xff]  }
  0xfc   :  { %v283_v16 = vpop.f32.mrb[11].mxu0  ;;  %1290 = vmatprep.subr.bf16.mxu1 %v4422_v1 }
 0x101   :  { %v4681_v17 = vpop.f32.mrb[0].mxu0  ;;  %v577_v18 = vpop.f32.mrb[16].mxu1 }
 0x102   :  { %v4683_v19 = vpop.f32.mrb[1].mxu0  ;;  %v579_v20 = vpop.f32.mrb[17].mxu1  ;;  %v497_v10 = vadd.f32 %v4706_v63, %v4681_v17 }
 0x103   :  { %v4685_v21 = vpop.f32.mrb[2].mxu0  ;;  %v581_v22 = vpop.f32.mrb[18].mxu1 }
 0x104   :  { %v4687_v23 = vpop.f32.mrb[3].mxu0  ;;  %v582_v24 = vpop.f32.mrb[19].mxu1  ;;  %v500_v17 = vadd.f32 %v4706_v63, %v4685_v21 }
 0x109   :  { %v416_v25 = vpop.f32.mrb[12].mxu0  ;;  %v3868_v26 = vpop.f32.mrb[20].mxu1 }
 0x10a   :  { %v4689_v28 = vadd.f32 %v416_v25, %v279_v12  ;;  %v418_v29 = vpop.f32.mrb[13].mxu0  ;;  %v618_v30 = vpop.f32.mrb[21].mxu1  ;;  %v4273_v12 = vld [vmem:[%s5578_s3 + $0x20] sm:$0xff]  }
 0x10b   :  { %v4691_v31 = vadd.f32 %v418_v29, %v281_v14  ;;  %v3869_v32 = vpop.f32.mrb[22].mxu1  ;;  %v420_v33 = vpop.f32.mrb[14].mxu0  ;;  %1291 = vmatpush1.bf16.msra.mxu1 %v4273_v12  ;;  %v4283_v12 = vld [vmem:[%s5578_s3 + $0x48] sm:$0xff]  }
 0x10c   :  { %v621_v34 = vpop.f32.mrb[23].mxu1  ;;  %v421_v35 = vpop.f32.mrb[15].mxu0  ;;  %1292 = vmatprep.subr.bf16.mxu1 %v4422_v1 }
 0x10d   :  { %v506_v35 = vmax.f32 %v497_v10, 0.0  ;;  %v4286_v10 = vld [vmem:[%s5578_s3 + $0xb8] sm:$0xff]  }
 0x111   :  { %v3874_v37 = vpop.f32.mrb[16].mxu0 }
 0x112   :  { %v732_v39 = vadd.f32 %v3874_v37, %v3868_v26  ;;  %v723_v40 = vpop.f32.mrb[17].mxu0  ;;  %v4274_v26 = vld [vmem:[%s5578_s3 + $0x88] sm:$0xff]  }
 0x113   :  { %v724_v42 = vadd.f32 %v723_v40, %v618_v30  ;;  %v3875_v43 = vpop.f32.mrb[18].mxu0  ;;  %v501_v30 = vadd.f32 %v4709_v5, %v4687_v23  ;;  %1177 = vmatpush1.bf16.msra.mxu0 %v4274_v26 }
 0x114   :  { %v726_v44 = vpop.f32.mrb[19].mxu0  ;;  %1178 = vmatprep.subr.bf16.mxu0 %v4422_v1 }
 0x115   :  { %v727_v45 = vadd.f32 %v726_v44, %v621_v34 }
 0x117   :  { %1179 = vmatpush1.bf16.msra.mxu0 %v4276_v41 }
 0x118   :  { %1180 = vmatprep.subr.bf16.mxu0 %v4422_v1 }
 0x119   :  { %v682_v49 = vpop.f32.mrb[24].mxu1  ;;  %v3880_v50 = vpop.f32.mrb[20].mxu0 }
 0x11a   :  { %v4699_v53 = vadd.f32 %v682_v49, %v577_v18  ;;  %v856_v54 = vadd.f32 %v3880_v50, %v732_v39  ;;  %v684_v55 = vpop.f32.mrb[25].mxu1  ;;  %v834_v56 = vpop.f32.mrb[21].mxu0  ;;  %v511_v18 = vmax.f32 %v502_v4, 0.0 }
 0x11b   :  { %v4704_v59 = vadd.f32 %v684_v55, %v579_v20  ;;  %v850_v60 = vadd.f32 %v834_v56, %v724_v42  ;;  %v686_v61 = vpop.f32.mrb[26].mxu1  ;;  %v3881_v62 = vpop.f32.mrb[22].mxu0  ;;  %v498_v20 = vadd.f32 %v4709_v5, %v4683_v19  ;;  %v4275_v19 = vld [vmem:[%s5578_s3 + $0x28] sm:$0xff]   ;;  %v509_v42 = vmax.f32 %v500_v17, 0.0  ;;  %1181 = vmatpush1.bf16.msra.mxu0 %v4278_v52 }
 0x11c   :  { %v865_v0 = vadd.f32 %v856_v54, %v493_v46  ;;  %v687_v2 = vpop.f32.mrb[27].mxu1  ;;  %v837_v3 = vpop.f32.mrb[23].mxu0  ;;  %1293 = vmatpush1.bf16.msra.mxu1 %v4275_v19  ;;  %v503_v54 = vadd.f32 %v4706_v63, %v4689_v28  ;;  %1182 = vmatprep.subr.bf16.mxu0 %v4422_v1 }
 0x11d   :  { %v859_v6 = vadd.f32 %v850_v60, %v493_v46  ;;  %v853_v8 = vadd.f32 %v837_v3, %v727_v45  ;;  %v507_v38 = vmax.f32 %v498_v20, 0.0  ;;  %1294 = vmatprep.subr.bf16.mxu1 %v4422_v1  ;;  %v4277_v45 = vld [vmem:[%s5578_s3 + $0x30] sm:$0xff]   ;;  %v504_v60 = vadd.f32 %v4709_v5, %v4691_v31  ;;  %v4280_v31 = vld [vmem:[%s5578_s3 + $0xa0] sm:$0xff]  }
 0x11e   :  { %v874_v11 = vmax.f32 %v865_v0, 0.0  ;;  %v4281_v3 = vld [vmem:[%s5578_s3 + $0x40] sm:$0xff]  }
 0x11f   :  { %v868_v14 = vmax.f32 %v859_v6, 0.0  ;;  %v862_v15 = vadd.f32 %v853_v8, %v493_v46  ;;  %v510_v46 = vmax.f32 %v501_v30, 0.0  ;;  %v513_v4 = vmax.f32 %v504_v60, 0.0  ;;  %1183 = vmatpush1.bf16.msra.mxu0 %v4280_v31 }
 0x120   :  { %v4720_v16 = vmax.f32 %v514_v9, %v874_v11  ;;  %1295 = vmatpush1.bf16.msra.mxu1 %v4277_v45  ;;  %1184 = vmatprep.subr.bf16.mxu0 %v4422_v1  ;;  %v4282_v11 = vld [vmem:[%s5578_s3 + $0xa8] sm:$0xff]  }
 0x121   :  { %v4725_v22 = vmax.f32 %v508_v13, %v868_v14  ;;  %v871_v24 = vmax.f32 %v862_v15, 0.0  ;;  %v783_v25 = vpop.f32.mrb[12].mxu1  ;;  %1296 = vmatprep.subr.bf16.mxu1 %v4422_v1  ;;  %v4284_v14 = vld [vmem:[%s5578_s3 + $0xb0] sm:$0xff]  }
 0x122   :  { %v857_v27 = vadd.f32 %v783_v25, %v4706_v63  ;;  %v785_v29 = vpop.f32.mrb[13].mxu1  ;;  %v4285_v15 = vld [vmem:[%s5578_s3 + $0x50] sm:$0xff]  }
 0x123   :  { %v4739_v32 = vmax.f32 %v511_v18, %v871_v24  ;;  %v858_v33 = vadd.f32 %v785_v29, %v4709_v5  ;;  %v787_v34 = vpop.f32.mrb[14].mxu1  ;;  %1185 = vmatpush1.bf16.msra.mxu0 %v4282_v11  ;;  %v4287_v18 = vld [vmem:[%s5578_s3 + $0x58] sm:$0xff]  }
 0x124   :  { %v866_v36 = vmax.f32 %v857_v27, 0.0  ;;  %v860_v21 = vadd.f32 %v787_v34, %v4706_v63  ;;  %v789_v37 = vpop.f32.mrb[15].mxu1  ;;  %1297 = vmatpush1.bf16.msra.mxu1 %v4279_v58  ;;  %1186 = vmatprep.subr.bf16.mxu0 %v4422_v1 }
 0x125   :  { %v867_v39 = vmax.f32 %v858_v33, 0.0  ;;  %v861_v40 = vadd.f32 %v789_v37, %v4709_v5  ;;  %v4212_v23 = vpack.i.bf16 %v4720_v16, %v4739_v32  ;;  %1298 = vmatprep.subr.bf16.mxu1 %v4422_v1  ;;  %v4247_v20 = vpack.i.bf16 %v4739_v32, %v4725_v22 }
 0x126   :  { %v4751_v43 = vmax.f32 %v506_v35, %v866_v36  ;;  %v869_v44 = vmax.f32 %v860_v21, 0.0 }
 0x127   :  { %v4756_v47 = vmax.f32 %v507_v38, %v867_v39  ;;  %v870_v48 = vmax.f32 %v861_v40, 0.0  ;;  %4213 = vrot.lane.b32.xlu1 %v4212_v23, %s4423_s24  ;;  %1187 = vmatpush1.bf16.msra.mxu0 %v4284_v14 }
 0x128   :  { %v4759_v49 = vmax.f32 %v509_v42, %v869_v44  ;;  %1299 = vmatpush1.bf16.msra.mxu1 %v4281_v3  ;;  %1188 = vmatprep.subr.bf16.mxu0 %v4422_v1 }
 0x129   :  { %v4762_v50 = vmax.f32 %v510_v46, %v870_v48  ;;  %v793_v51 = vpop.f32.mrb[28].mxu1  ;;  %1300 = vmatprep.subr.bf16.mxu1 %v4422_v1 }
 0x12a   :  { %v854_v55 = vadd.f32 %v793_v51, %v4699_v53  ;;  %v795_v56 = vpop.f32.mrb[29].mxu1  ;;  %v4217_v57 = vpack.i.bf16 %v4759_v49, %v4751_v43 }
 0x12b   :  { %v855_v61 = vadd.f32 %v795_v56, %v4704_v59  ;;  %v797_v62 = vpop.f32.mrb[30].mxu1  ;;  %v512_v59 = vmax.f32 %v503_v54, 0.0  ;;  %1189 = vmatpush1.bf16.msra.mxu0 %v4286_v10 }
 0x12c   :  { %v863_v0 = vadd.f32 %v854_v55, %v4706_v63  ;;  %v798_v28 = vpop.f32.mrb[31].mxu1  ;;  %4218 = vrot.lane.b32.xlu0 %v4217_v57, %s4423_s24  ;;  %4223 = vrot.lane.b32.xlu1 %v4217_v57, %s4424_s27  ;;  %v4227_v63 = vpack.i.bf16 %v4762_v50, %v4756_v47 }
 0x12d   :  { %v864_v53 = vadd.f32 %v855_v61, %v4709_v5  ;;  %1301 = vmatpush1.bf16.msra.mxu1 %v4283_v12  ;;  %1438 = vmatprep.subr.bf16.mxu0 %v4422_v1 }
 0x12e   :  { %v872_v2 = vmax.f32 %v863_v0, 0.0  ;;  %1302 = vmatprep.subr.bf16.mxu1 %v4422_v1 }
 0x12f   :  { %v873_v5 = vmax.f32 %v864_v53, 0.0 }
 0x130   :  { %v4793_v6 = vmax.f32 %v512_v59, %v872_v2  ;;  %4228 = vrot.lane.b32.xlu1 %v4227_v63, %s4425_s19 }
 0x131   :  { %v4796_v8 = vmax.f32 %v513_v4, %v873_v5  ;;  %1303 = vmatpush1.bf16.msra.mxu1 %v4285_v15 }
 0x132   :  { %v4237_v7 = vpack.i.bf16 %v4756_v47, %v4793_v6  ;;  %v4232_v9 = vpack.i.bf16 %v4725_v22, %v4793_v6  ;;  %1304 = vmatprep.subr.bf16.mxu1 %v4422_v1 }
 0x133   :  { %v4242_v13 = vpack.i.bf16 %v4796_v8, %v4762_v50 }
 0x134   :  { %4238 = vrot.lane.b32.xlu1 %v4237_v7, %s4424_s27  ;;  %4233 = vrot.lane.b32.xlu0 %v4232_v9, %s4423_s24 }
 0x135   :  { %1305 = vmatpush1.bf16.msra.mxu1 %v4287_v18 }
 0x138   :  { %957 = vrot.lane.b32.xlu1 %v4720_v16, %s4424_s27  ;;  %4243 = vrot.lane.b32.xlu0 %v4242_v13, %s4424_s27 }
 0x13c   :  { %912 = vrot.lane.b32.xlu0 %v4796_v8, %s4425_s19 }
 0x140   :  { %4248 = vrot.lane.b32.xlu0 %v4247_v20, %s4424_s27 }
 0x199   :  { %v4837_v24 = vpop.permute.xlu1 %4213 }
 0x19a   :  { %v4216_v37 = vunpack.i.h.bf16 %v4837_v24  ;;  %v4215_v51 = vunpack.i.l.bf16 %v4837_v24 }
 0x19c   :  { %v943_v56 = vsel %vm929_vm2, %v4720_v16, %v4216_v37  ;;  %v942_v5 = vsel %vm929_vm2, %v4739_v32, %v4215_v51 }
 0x19e   :  { %v4224_v25 = vpop.permute.xlu1 %4223  ;;  %v4219_v26 = vpop.permute.xlu0 %4218 }
 0x19f   :  { %v4220_v27 = vunpack.i.l.bf16 %v4219_v26  ;;  %v4221_v29 = vunpack.i.h.bf16 %v4219_v26  ;;  %v4226_v19 = vunpack.i.h.bf16 %v4224_v25  ;;  %v4225_v30 = vunpack.i.l.bf16 %v4224_v25 }
 0x1a1   :  { %v930_v38 = vsel %vm929_vm2, %v4751_v43, %v4220_v27  ;;  %v963_v40 = vsel %vm929_vm2, %v4221_v29, %v4226_v19  ;;  %v962_v23 = vsel %vm929_vm2, %v4220_v27, %v4225_v30  ;;  %v931_v55 = vsel %vm929_vm2, %v4759_v49, %v4221_v29 }
 0x1a2   :  { %v4229_v17 = vpop.permute.xlu1 %4228 }
 0x1a3   :  { %v4231_v33 = vunpack.i.h.bf16 %v4229_v17  ;;  %v4230_v34 = vunpack.i.l.bf16 %v4229_v17 }
 0x1a5   :  { %v965_v42 = vsel %vm933_vm3, %v962_v23, %v4230_v34  ;;  %v966_v44 = vsel %vm933_vm3, %v963_v40, %v4231_v33 }
 0x1a6   :  { %v4239_v35 = vpop.permute.xlu1 %4238  ;;  %v4839_v36 = vpop.permute.xlu0 %4233  ;;  %v968_v60 = vsel %vm937_vm4, %v965_v42, %v4756_v47  ;;  %v969_v61 = vsel %vm937_vm4, %v966_v44, %v4762_v50 }
 0x1a7   :  { %v4241_v21 = vunpack.i.h.bf16 %v4239_v35  ;;  %v4235_v39 = vunpack.i.l.bf16 %v4839_v36  ;;  %v4240_v45 = vunpack.i.l.bf16 %v4239_v35  ;;  %v4236_v49 = vunpack.i.h.bf16 %v4839_v36 }
 0x1a9   :  { %v934_v41 = vsel %vm933_vm3, %v930_v38, %v4241_v21  ;;  %v932_v58 = vsel %vm929_vm2, %v4793_v6, %v4235_v39  ;;  %v964_v31 = vsel %vm929_vm2, %v4235_v39, %v4240_v45  ;;  %v941_v7 = vsel %vm929_vm2, %v4725_v22, %v4236_v49 }
 0x1aa   :  { %v958_v46 = vpop.permute.xlu1 %957  ;;  %v4244_v48 = vpop.permute.xlu0 %4243  ;;  %v938_v43 = vsel %vm937_vm4, %v934_v41, %v4230_v34 }
 0x1ab   :  { %v4246_v52 = vunpack.i.h.bf16 %v4244_v48  ;;  %v4245_v54 = vunpack.i.l.bf16 %v4244_v48  ;;  %v973_v57 = vsel %vm929_vm2, %v4216_v37, %v958_v46  ;;  %v4865_v28 = vmax.f32 %v938_v43, %v968_v60 }
 0x1ac   :  { %v979_v59 = vmax.f32 %v943_v56, %v973_v57 }
 0x1ad   :  { %v935_v62 = vsel %vm933_vm3, %v931_v55, %v4245_v54  ;;  %v936_v0 = vsel %vm933_vm3, %v932_v58, %v4246_v52  ;;  %v985_v6 = vrot.slane %v4865_v28, 2  ;;  %v1034_v11 = vrot.slane %v4865_v28, 1 }
 0x1ae   :  { %v939_v16 = vsel %vm937_vm4, %v935_v62, %v4231_v33  ;;  %v913_v53 = vpop.permute.xlu0 %912  ;;  %v1052_v15 = vrot.slane %v979_v59, 5  ;;  %v1057_v10 = vrot.slane %v979_v59, 7  ;;  %v1039_v22 = vrot.slane %v4865_v28, 3 }
 0x1af   :  { %v4870_v2 = vmax.f32 %v939_v16, %v969_v61  ;;  %v940_v47 = vsel %vm937_vm4, %v936_v0, %v913_v53  ;;  %v967_v50 = vsel %vm933_vm3, %v964_v31, %v913_v53  ;;  %v4288_v61 = vld [vmem:[%s5578_s3 + $0xc0] sm:$0xff]   ;;  %v4289_v16 = vld [vmem:[%s5578_s3 + $0xc8] sm:$0xff]   ;;  %v4290_v53 = vld [vmem:[%s5578_s3 + $0xd0] sm:$0xff]  }
 0x1b0   :  { %v970_v63 = vsel %vm937_vm4, %v967_v50, %v4796_v8  ;;  %v1000_v8 = vrot.slane %v979_v59, 6  ;;  %v4291_v31 = vld [vmem:[%s5578_s3 + $0xd8] sm:$0xff]   ;;  %v4294_v50 = vld [vmem:[%s5578_s3 + $0xf0] sm:$0xff]  }
 0x1b1   :  { %v4876_v3 = vmax.f32 %v940_v47, %v970_v63  ;;  %v986_v4 = vrot.slane %v4870_v2, 2  ;;  %v1040_v14 = vrot.slane %v4870_v2, 3  ;;  %v1048_v24 = vrot.slane %v4870_v2, 5  ;;  %v4293_v47 = vld [vmem:[%s5578_s3 + $0xe8] sm:$0xff]   ;;  %v4295_v63 = vld [vmem:[%s5578_s3 + $0xf8] sm:$0xff]  }
 0x1b2   :  { %v4249_v9 = vpop.permute.xlu0 %4248  ;;  %v993_v25 = vrot.slane %v4870_v2, 4 }
 0x1b3   :  { %v1049_v12 = vrot.slane %v4876_v3, 5  ;;  %v4251_v13 = vunpack.i.h.bf16 %v4249_v9  ;;  %v4250_v18 = vunpack.i.l.bf16 %v4249_v9  ;;  %v987_v32 = vsel %vm984_vm8, %v985_v6, %v986_v4  ;;  %v4296_v4 = vld [vmem:[%s5578_s3 + $0x100] sm:$0xff]  }
 0x1b4   :  { %v999_v26 = vrot.slane %v4876_v3, 6  ;;  %v1056_v17 = vrot.slane %v4876_v3, 7  ;;  %v1041_v30 = vsel %vm1038_vm6, %v1039_v22, %v1040_v14  ;;  %v1004_v34 = vsel %vm1003_vm5, %v4865_v28, %v987_v32  ;;  %v4302_v28 = vld [vmem:[%s5580_s7 + $0x48] sm:$0xff]   ;;  %v4307_v32 = vld [vmem:[%s5580_s7 + $0x98] sm:$0xff]   ;;  %v4309_v22 = vld [vmem:[%s5580_s7 + $0xa0] sm:$0xff]  }
 0x1b5   :  { %v972_v20 = vsel %vm929_vm2, %v4215_v51, %v4251_v13  ;;  %v971_v29 = vsel %vm929_vm2, %v4236_v49, %v4250_v18  ;;  %v1050_v33 = vsel %vm1047_vm7, %v1048_v24, %v1049_v12  ;;  %v1060_v60 = vsel %vm1003_vm5, %v1034_v11, %v1041_v30  ;;  %v4306_v18 = vld [vmem:[%s5580_s7 + $0x58] sm:$0xff]   ;;  %v4310_v24 = vld [vmem:[%s5580_s7 + $0x68] sm:$0xff]  }
 0x1b6   :  { %v977_v27 = vmax.f32 %v942_v5, %v972_v20  ;;  %v975_v19 = vmax.f32 %v941_v7, %v971_v29  ;;  %v1062_v44 = vsel %vm1003_vm5, %v1050_v33, %v1056_v17  ;;  %v1006_v45 = vsel %vm1003_vm5, %v993_v25, %v999_v26  ;;  %v4297_v5 = vld [vmem:[%s5578_s3 + $0x108] sm:$0xff]   ;;  %v4298_v7 = vld [vmem:[%s5578_s3 + $0x110] sm:$0xff]   ;;  %v4308_v20 = vld [vmem:[%s5580_s7 + $0x60] sm:$0xff]  }
 0x1b7   :  { %v1089_v62 = vpack.c.bf16 %v1062_v44, %v1060_v60  ;;  %v1032_v0 = vpack.c.bf16 %v1006_v45, %v1004_v34  ;;  %v1326_v9 = vrot.slane %v4870_v2, 6  ;;  %v1332_v13 = vsel %vm1003_vm5, %v985_v6, %v993_v25  ;;  %v4303_v2 = vld [vmem:[%s5580_s7 + $0x88] sm:$0xff]   ;;  %v4305_v6 = vld [vmem:[%s5580_s7 + $0x90] sm:$0xff]   ;;  %v4315_v29 = vld [vmem:[%s5580_s7 + $0xb8] sm:$0xff]  }
 0x1b8   :  { %v1043_v35 = vrot.slane %v977_v27, 3  ;;  %v1051_v36 = vrot.slane %v977_v27, 5  ;;  %v989_v21 = vrot.slane %v977_v27, 2  ;;  %v994_v37 = vrot.slane %v977_v27, 4  ;;  %v4311_v25 = vld [vmem:[%s5580_s7 + $0xa8] sm:$0xff]   ;;  %v4313_v17 = vld [vmem:[%s5580_s7 + $0xb0] sm:$0xff]  }
 0x1b9   :  { %v1035_v38 = vrot.slane %v975_v19, 1  ;;  %v1042_v39 = vrot.slane %v975_v19, 3  ;;  %v988_v40 = vrot.slane %v975_v19, 2  ;;  %v1328_v23 = vrot.slane %v977_v27, 6  ;;  %v4314_v27 = vld [vmem:[%s5580_s7 + $0x78] sm:$0xff]  }
 0x1ba   :  { %v1053_v41 = vsel %vm1047_vm7, %v1051_v36, %v1052_v15  ;;  %v1007_v42 = vsel %vm1003_vm5, %v994_v37, %v1000_v8  ;;  %v1327_v11 = vsel %vm1325_vm9, %v1326_v9, %v999_v26  ;;  %v4426_v15 = vmov 0.0   ;;  %v4312_v26 = vld [vmem:[%s5580_s7 + $0x70] sm:$0xff]  }
 0x1bb   :  { %v1044_v46 = vsel %vm1038_vm6, %v1042_v39, %v1043_v35  ;;  %v1063_v48 = vsel %vm1003_vm5, %v1053_v41, %v1057_v10  ;;  %v990_v51 = vsel %vm984_vm8, %v988_v40, %v989_v21  ;;  %v1329_v43 = vsel %vm1325_vm9, %v1328_v23, %v1000_v8  ;;  %v4299_v8 = vld [vmem:[%s5578_s3 + $0x118] sm:$0xff]   ;;  %3882 = vmatprep.subr.bf16.mxu1 %v4426_v15  ;;  %v4300_v10 = vld [vmem:[%s5580_s7 + $0x40] sm:$0xff]  }
 0x1bc   :  { %v1061_v52 = vsel %vm1003_vm5, %v1035_v38, %v1044_v46  ;;  %v1005_v54 = vsel %vm1003_vm5, %v975_v19, %v990_v51  ;;  %v1333_v55 = vsel %vm1003_vm5, %v988_v40, %v994_v37  ;;  %v1335_v56 = vsel %vm1003_vm5, %v1329_v43, %v979_v59  ;;  %v4292_v59 = vld [vmem:[%s5578_s3 + $0xe0] sm:$0xff]  }
 0x1bd   :  { %v1090_v57 = vpack.c.bf16 %v1063_v48, %v1061_v52  ;;  %v1033_v58 = vpack.c.bf16 %v1007_v42, %v1005_v54  ;;  %v1362_v49 = vpack.c.bf16 %v1335_v56, %v1333_v55  ;;  %v1334_v12 = vsel %vm1003_vm5, %v1327_v11, %v4876_v3  ;;  %v4304_v3 = vld [vmem:[%s5580_s7 + $0x50] sm:$0xff]   ;;  %v3407_v23 = vld [vmem:[%s5581_s4] ss:$0 sm:$0xff] }
 0x1be   :  { %v1361_v14 = vpack.c.bf16 %v1334_v12, %v1332_v13  ;;  %v4318_v12 = vld [vmem:[%s5580_s7 + $0x8] sm:$0xff]  }
 0x1bf   :  { %3356 = vmatprep.mubr.msk.bf16.mxu0 %vm933_vm3, %v1090_v57  ;;  %3369 = vmatprep.mubr.msk.bf16.mxu1 %vm933_vm3, %v1033_v58 }
 0x1c0   :  { %1199 = vmatmul.mubr.bf16.vlgmr.msra.gmra.mrb[24].mxu0 %v1089_v62  ;;  %1315 = vmatmul.mubr.bf16.vlgmr.msra.gmra.mrb[32].mxu1 %v1032_v0  ;;  %v4316_v62 = vld [vmem:[%s5580_s7] sm:$0xff]  }
 0x1c1   :  { %1439 = vmatpush1.bf16.msra.mxu0 %v4288_v61  ;;  %3406 = vmatprep.mubr.msk.bf16.mxu0 %vm933_vm3, %v1362_v49 }
 0x1c2   :  { %1440 = vmatprep.subr.bf16.mxu0 %v4422_v1  ;;  %3883 = vmatpush3.bf16.msra.mxu1 %v4300_v10  ;;  %v4319_v10 = vld [vmem:[%s5580_s7 + $0x108] sm:$0xff]  }
 0x1c3   :  { %3884 = vmatprep.subr.bf16.mxu1 %v4426_v15  ;;  %3898 = vmatprep.mubr.msk.bf16.mxu1 %vm4427_vm10, %v4426_v15 }
 0x1c5   :  { %1441 = vmatpush1.bf16.msra.mxu0 %v4289_v16 }
 0x1c6   :  { %1442 = vmatprep.subr.bf16.mxu0 %v4422_v1  ;;  %3885 = vmatpush3.bf16.msra.mxu1 %v4302_v28  ;;  %v4320_v28 = vld [vmem:[%s5580_s7 + $0x10] sm:$0xff]  }
 0x1c7   :  { %3886 = vmatprep.subr.bf16.mxu1 %v4426_v15 }
 0x1c9   :  { %1443 = vmatpush1.bf16.msra.mxu0 %v4290_v53 }
 0x1ca   :  { %1444 = vmatprep.subr.bf16.mxu0 %v4422_v1  ;;  %3887 = vmatpush3.bf16.msra.mxu1 %v4304_v3 }
 0x1cb   :  { %3888 = vmatprep.subr.bf16.mxu1 %v4426_v15 }
 0x1cd   :  { %1445 = vmatpush1.bf16.msra.mxu0 %v4291_v31 }
 0x1ce   :  { %1446 = vmatprep.subr.bf16.mxu0 %v4422_v1  ;;  %3889 = vmatpush3.bf16.msra.mxu1 %v4306_v18 }
 0x1cf   :  { %3890 = vmatprep.subr.bf16.mxu1 %v4426_v15 }
 0x1d1   :  { %1447 = vmatpush1.bf16.msra.mxu0 %v4292_v59 }
 0x1d2   :  { %1448 = vmatprep.subr.bf16.mxu0 %v4422_v1  ;;  %3891 = vmatpush3.bf16.msra.mxu1 %v4308_v20 }
 0x1d3   :  { %3892 = vmatprep.subr.bf16.mxu1 %v4426_v15 }
 0x1d5   :  { %1449 = vmatpush1.bf16.msra.mxu0 %v4293_v47 }
 0x1d6   :  { %1450 = vmatprep.subr.bf16.mxu0 %v4422_v1  ;;  %3893 = vmatpush3.bf16.msra.mxu1 %v4310_v24 }
 0x1d7   :  { %3894 = vmatprep.subr.bf16.mxu1 %v4426_v15 }
 0x1d9   :  { %1451 = vmatpush1.bf16.msra.mxu0 %v4294_v50 }
 0x1da   :  { %1452 = vmatprep.subr.bf16.mxu0 %v4422_v1  ;;  %3895 = vmatpush3.bf16.msra.mxu1 %v4312_v26 }
 0x1db   :  { %3896 = vmatprep.subr.bf16.mxu1 %v4426_v15 }
 0x1dd   :  { %1453 = vmatpush1.bf16.msra.mxu0 %v4295_v63  ;;  %v4317_v63 = vld [vmem:[%s5580_s7 + $0x100] sm:$0xff]  }
 0x1de   :  { %1454 = vmatprep.subr.bf16.mxu0 %v4422_v1  ;;  %3897 = vmatpush3.bf16.msra.mxu1 %v4314_v27  ;;  %v4323_v27 = vld [vmem:[%s5580_s7 + $0x118] sm:$0xff]  }
 0x1df   :  { %3902 = vmatprep.subr.bf16.mxu1 %v4426_v15 }
 0x1e1   :  { %1455 = vmatpush1.bf16.msra.mxu0 %v4296_v4 }
 0x1e2   :  { %1456 = vmatprep.subr.bf16.mxu0 %v4422_v1 }
 0x1e5   :  { %1457 = vmatpush1.bf16.msra.mxu0 %v4297_v5 }
 0x1e6   :  { %1458 = vmatprep.subr.bf16.mxu0 %v4422_v1 }
 0x1e9   :  { %1459 = vmatpush1.bf16.msra.mxu0 %v4298_v7 }
 0x1ea   :  { %1460 = vmatprep.subr.bf16.mxu0 %v4422_v1  ;;  %v4301_v1 = vld [vmem:[%s5580_s7 + $0x80] sm:$0xff]  }
 0x1ed   :  { %1461 = vmatpush1.bf16.msra.mxu0 %v4299_v8 }
 0x1ee   :  { %3922 = vmatprep.subr.bf16.mxu0 %v4426_v15 }
 0x1f0   :  { %1471 = vmatmul.mubr.bf16.vlgmr.msra.gmra.mrb[28].mxu0 %v1361_v14 }
 0x1f1   :  { %3923 = vmatpush3.bf16.msra.mxu0 %v4301_v1  ;;  %3938 = vmatprep.mubr.msk.bf16.mxu0 %vm4427_vm10, %v4426_v15 }
 0x1f2   :  { %3924 = vmatprep.subr.bf16.mxu0 %v4426_v15 }
 0x1f5   :  { %3925 = vmatpush3.bf16.msra.mxu0 %v4303_v2 }
 0x1f6   :  { %3926 = vmatprep.subr.bf16.mxu0 %v4426_v15 }
 0x1f9   :  { %3927 = vmatpush3.bf16.msra.mxu0 %v4305_v6 }
 0x1fa   :  { %3928 = vmatprep.subr.bf16.mxu0 %v4426_v15 }
 0x1fd   :  { %3929 = vmatpush3.bf16.msra.mxu0 %v4307_v32 }
 0x1fe   :  { %3930 = vmatprep.subr.bf16.mxu0 %v4426_v15 }
 0x201   :  { %3931 = vmatpush3.bf16.msra.mxu0 %v4309_v22 }
 0x202   :  { %3932 = vmatprep.subr.bf16.mxu0 %v4426_v15 }
 0x205   :  { %3933 = vmatpush3.bf16.msra.mxu0 %v4311_v25  ;;  %v4321_v25 = vld [vmem:[%s5580_s7 + $0x110] sm:$0xff]  }
 0x206   :  { %3934 = vmatprep.subr.bf16.mxu0 %v4426_v15 }
 0x209   :  { %3935 = vmatpush3.bf16.msra.mxu0 %v4313_v17  ;;  %v4322_v17 = vld [vmem:[%s5580_s7 + $0x18] sm:$0xff]  }
 0x20a   :  { %3936 = vmatprep.subr.bf16.mxu0 %v4426_v15 }
 0x20d   :  { %3937 = vmatpush3.bf16.msra.mxu0 %v4315_v29  ;;  %v4324_v29 = vld [vmem:[%s5580_s7 + $0x20] sm:$0xff]  }
 0x20e   :  { %3962 = vmatprep.subr.bf16.mxu0 %v4426_v15 }
 0x293   :  { %v1200_v19 = vpop.f32.mrb[24].mxu0  ;;  %v1316_v30 = vpop.f32.mrb[32].mxu1 }
 0x294   :  { %v1317_v33 = vadd.f32 %v1316_v30, %v1200_v19  ;;  %v1202_v34 = vpop.f32.mrb[25].mxu0  ;;  %v1318_v35 = vpop.f32.mrb[33].mxu1  ;;  %v4325_v19 = vld [vmem:[%s5580_s7 + $0x120] sm:$0xff]   ;;  %v4326_v30 = vld [vmem:[%s5580_s7 + $0x28] sm:$0xff]  }
 0x295   :  { %v1203_v36 = vpop.f32.mrb[26].mxu0  ;;  %v1319_v21 = vpop.f32.mrb[34].mxu1  ;;  %v4328_v34 = vld [vmem:[%s5580_s7 + $0x30] sm:$0xff]  }
 0x296   :  { %v1320_v37 = vadd.f32 %v1319_v21, %v1203_v36  ;;  %v1205_v38 = vpop.f32.mrb[27].mxu0  ;;  %v1321_v39 = vpop.f32.mrb[35].mxu1  ;;  %v4329_v35 = vld [vmem:[%s5580_s7 + $0x130] sm:$0xff]   ;;  %v4330_v36 = vld [vmem:[%s5580_s7 + $0x38] sm:$0xff]  }
 0x297   :  { %v4331_v21 = vld [vmem:[%s5580_s7 + $0x138] sm:$0xff]   ;;  %v4333_v39 = vld [vmem:[%s5580_s7 + $0x180] sm:$0xff]  }
 0x2c3   :  { %v1472_v40 = vpop.f32.mrb[28].mxu0 }
 0x2c4   :  { %v1479_v41 = vadd.f32 %v1472_v40, %v1317_v33  ;;  %v1474_v42 = vpop.f32.mrb[29].mxu0  ;;  %v4327_v33 = vld [vmem:[%s5580_s7 + $0x128] sm:$0xff]  }
 0x2c5   :  { %v1475_v44 = vpop.f32.mrb[30].mxu0  ;;  %v4336_v42 = vld [vmem:[%s5580_s7 + $0xd0] sm:$0xff]  }
 0x2c6   :  { %v1488_v45 = vadd.f32 %v3407_v23, %v1479_v41  ;;  %v1480_v46 = vadd.f32 %v1475_v44, %v1320_v37  ;;  %v1477_v48 = vpop.f32.mrb[31].mxu0  ;;  %v4332_v37 = vld [vmem:[%s5580_s7 + $0xc0] sm:$0xff]   ;;  %v4335_v41 = vld [vmem:[%s5580_s7 + $0x188] sm:$0xff]   ;;  %v4337_v44 = vld [vmem:[%s5580_s7 + $0x190] sm:$0xff]  }
 0x2c7   :  { %v4340_v48 = vld [vmem:[%s5580_s7 + $0xe0] sm:$0xff]  }
 0x2c8   :  { %v1490_v51 = vmax.f32 %v1488_v45, 0.0  ;;  %v1489_v43 = vadd.f32 %v3407_v23, %v1480_v46  ;;  %v4334_v23 = vld [vmem:[%s5580_s7 + $0xc8] sm:$0xff]   ;;  %v4338_v45 = vld [vmem:[%s5580_s7 + $0xd8] sm:$0xff]  }
 0x2c9   :  { %v4339_v46 = vld [vmem:[%s5580_s7 + $0x198] sm:$0xff]  }
 0x2ca   :  { %v1491_v52 = vmax.f32 %v1489_v43, 0.0  ;;  %v1515_v54 = vrot.slane %v1490_v51, 1  ;;  %v1712_v55 = vrot.slane %v1490_v51, 2  ;;  %v1936_v56 = vrot.slane %v1490_v51, 4  ;;  %v4342_v43 = vld [vmem:[%s5580_s7 + $0xe8] sm:$0xff]  }
 0x2cb   :  { %v1824_v57 = vrot.slane %v1490_v51, 3  ;;  %v2160_v58 = vrot.slane %v1490_v51, 6  ;;  %v2048_v60 = vrot.slane %v1490_v51, 5  ;;  %v2272_v8 = vrot.slane %v1490_v51, 7 }
 0x2cc   :  { %v1517_v61 = vsel %vm1495_vm11, %v1515_v54, %v1491_v52  ;;  %v1714_v0 = vrot.slane %v1491_v52, 1  ;;  %v1493_v49 = vrot.slane %v1491_v52, 7  ;;  %v1938_v16 = vrot.slane %v1491_v52, 3 }
 0x2cd   :  { %v1535_v53 = vpack.c.bf16 %v1517_v61, %v1517_v61  ;;  %v1826_v31 = vrot.slane %v1491_v52, 2  ;;  %v2162_v59 = vrot.slane %v1491_v52, 5  ;;  %v2050_v47 = vrot.slane %v1491_v52, 4 }
 0x2ce   :  { %v1716_v50 = vsel %vm1495_vm11, %v1712_v55, %v1714_v0  ;;  %v5061_v4 = vsel %vm1495_vm11, %v1490_v51, %v1493_v49  ;;  %v5064_v5 = vsel %vm1495_vm11, %v1936_v56, %v1938_v16  ;;  %v2274_v7 = vrot.slane %v1491_v52, 6  ;;  %v4350_v0 = vld [vmem:[%s5580_s7 + $0x150] sm:$0xff]   ;;  %v4352_v16 = vld [vmem:[%s5580_s7 + $0x160] sm:$0xff]  }
 0x2cf   :  { %3899 = vmatmul.mubr.bf16.vlgmr.msra.gmra.mrb[36].mxu1 %v1535_v53  ;;  %v1734_v9 = vpack.c.bf16 %v1716_v50, %v1716_v50  ;;  %v5067_v11 = vsel %vm1495_vm11, %v1824_v57, %v1826_v31  ;;  %v5075_v13 = vsel %vm1495_vm11, %v2160_v58, %v2162_v59  ;;  %v5078_v14 = vsel %vm1495_vm11, %v2048_v60, %v2050_v47  ;;  %v4348_v58 = vld [vmem:[%s5580_s7 + $0x140] sm:$0xff]   ;;  %v4353_v53 = vld [vmem:[%s5580_s7 + $0x168] sm:$0xff]   ;;  %v4354_v31 = vld [vmem:[%s5580_s7 + $0x170] sm:$0xff]  }
 0x2d0   :  { %3903 = vmatpush3.bf16.msra.mxu1 %v4316_v62  ;;  %3918 = vmatprep.mubr.msk.bf16.mxu1 %vm4427_vm10, %v4426_v15  ;;  %v5085_v1 = vsel %vm1495_vm11, %v2272_v8, %v2274_v7  ;;  %v2549_v2 = vsel %vm1325_vm9, %v1490_v51, %v1712_v55  ;;  %v2569_v3 = vsel %vm1325_vm9, %v1515_v54, %v1824_v57  ;;  %v4341_v51 = vld [vmem:[%s5580_s7 + $0x1a0] sm:$0xff]   ;;  %v4344_v54 = vld [vmem:[%s5580_s7 + $0xf0] sm:$0xff]   ;;  %v4347_v57 = vld [vmem:[%s5580_s7 + $0x1b8] sm:$0xff]  }
 0x2d1   :  { %3939 = vmatmul.mubr.bf16.vlgmr.msra.gmra.mrb[32].mxu0 %v1734_v9  ;;  %3904 = vmatprep.subr.bf16.mxu1 %v4426_v15  ;;  %v2550_v6 = vsel %vm1003_vm5, %v2549_v2, %v2050_v47  ;;  %v2570_v18 = vsel %vm1003_vm5, %v2569_v3, %v2162_v59  ;;  %v2766_v32 = vsel %vm1325_vm9, %v1712_v55, %v1936_v56  ;;  %v4345_v55 = vld [vmem:[%s5580_s7 + $0x1b0] sm:$0xff]   ;;  %v4346_v56 = vld [vmem:[%s5580_s7 + $0xf8] sm:$0xff]   ;;  %v4349_v62 = vld [vmem:[%s5580_s7 + $0x148] sm:$0xff]  }
 0x2d2   :  { %3963 = vmatpush3.bf16.msra.mxu0 %v4317_v63  ;;  %3978 = vmatprep.mubr.msk.bf16.mxu0 %vm4427_vm10, %v4426_v15  ;;  %v5099_v20 = vsel %vm984_vm8, %v2550_v6, %v2274_v7  ;;  %v5102_v22 = vsel %vm984_vm8, %v2570_v18, %v1493_v49  ;;  %v2767_v24 = vsel %vm1003_vm5, %v2766_v32, %v2274_v7  ;;  %v4351_v49 = vld [vmem:[%s5580_s7 + $0x158] sm:$0xff]   ;;  %v4356_v47 = vld [vmem:[%s5580_s7 + $0x1c0] sm:$0xff]   ;;  %v4357_v63 = vld [vmem:[%s5580_s7 + $0x1c8] sm:$0xff]  }
 0x2d3   :  { %3964 = vmatprep.subr.bf16.mxu0 %v4426_v15  ;;  %v5110_v26 = vsel %vm984_vm8, %v2767_v24, %v1491_v52  ;;  %v1513_v38 = vpack.c.bf16 %v5061_v4, %v5061_v4  ;;  %v1958_v40 = vpack.c.bf16 %v5064_v5, %v5064_v5  ;;  %v4343_v52 = vld [vmem:[%s5580_s7 + $0x1a8] sm:$0xff]   ;;  %v1846_v60 = vpack.c.bf16 %v5067_v11, %v5067_v11  ;;  %v4355_v59 = vld [vmem:[%s5580_s7 + $0x178] sm:$0xff]   ;;  %v4358_v4 = vld [vmem:[%s5580_s7 + $0x1d0] sm:$0xff]  }
 0x2d4   :  { %3905 = vmatpush3.bf16.msra.mxu1 %v4318_v12  ;;  %v2182_v61 = vpack.c.bf16 %v5075_v13, %v5075_v13  ;;  %v2070_v50 = vpack.c.bf16 %v5078_v14, %v5078_v14  ;;  %v4359_v5 = vld [vmem:[%s5580_s7 + $0x1d8] sm:$0xff]   ;;  %v4360_v7 = vld [vmem:[%s5580_s7 + $0x1e0] sm:$0xff]   ;;  %v4361_v9 = vld [vmem:[%s5580_s7 + $0x1e8] sm:$0xff]   ;;  %v2294_v13 = vpack.c.bf16 %v5085_v1, %v5085_v1  ;;  %v2568_v18 = vpack.c.bf16 %v5099_v20, %v5099_v20 }
 0x2d5   :  { %3906 = vmatprep.subr.bf16.mxu1 %v4426_v15  ;;  %v4362_v11 = vld [vmem:[%s5580_s7 + $0x1f0] sm:$0xff]   ;;  %v4363_v8 = vld [vmem:[%s5580_s7 + $0x1f8] sm:$0xff]   ;;  %v4364_v12 = vld [vmem:[%s5582_s5] sm:$0xff]  }
 0x2d6   :  { %3965 = vmatpush3.bf16.msra.mxu0 %v4319_v10  ;;  %v4365_v14 = vld [vmem:[%s5582_s5 + $0x8] sm:$0xff]   ;;  %v4366_v10 = vld [vmem:[%s5582_s5 + $0x10] sm:$0xff]   ;;  %v4367_v1 = vld [vmem:[%s5582_s5 + $0x18] sm:$0xff]  }
 0x2d7   :  { %3966 = vmatprep.subr.bf16.mxu0 %v4426_v15  ;;  %v4369_v2 = vld [vmem:[%s5582_s5 + $0x28] sm:$0xff]   ;;  %v4370_v3 = vld [vmem:[%s5582_s5 + $0x30] sm:$0xff]   ;;  %v4371_v6 = vld [vmem:[%s5582_s5 + $0x38] sm:$0xff]  }
 0x2d8   :  { %3907 = vmatpush3.bf16.msra.mxu1 %v4320_v28  ;;  %v4368_v28 = vld [vmem:[%s5582_s5 + $0x20] sm:$0xff]   ;;  %v4373_v24 = vld [vmem:[%s5583_s9 + $0x8] sm:$0xff]  }
 0x2d9   :  { %3908 = vmatprep.subr.bf16.mxu1 %v4426_v15  ;;  %v4372_v32 = vld [vmem:[%s5583_s9] sm:$0xff]  }
 0x2da   :  { %3967 = vmatpush3.bf16.msra.mxu0 %v4321_v25 }
 0x2db   :  { %3968 = vmatprep.subr.bf16.mxu0 %v4426_v15 }
 0x2dc   :  { %3909 = vmatpush3.bf16.msra.mxu1 %v4322_v17 }
 0x2dd   :  { %3910 = vmatprep.subr.bf16.mxu1 %v4426_v15 }
 0x2de   :  { %3969 = vmatpush3.bf16.msra.mxu0 %v4323_v27 }
 0x2df   :  { %3970 = vmatprep.subr.bf16.mxu0 %v4426_v15 }
 0x2e0   :  { %3911 = vmatpush3.bf16.msra.mxu1 %v4324_v29 }
 0x2e1   :  { %3912 = vmatprep.subr.bf16.mxu1 %v4426_v15 }
 0x2e2   :  { %3971 = vmatpush3.bf16.msra.mxu0 %v4325_v19 }
 0x2e3   :  { %3972 = vmatprep.subr.bf16.mxu0 %v4426_v15 }
 0x2e4   :  { %3913 = vmatpush3.bf16.msra.mxu1 %v4326_v30 }
 0x2e5   :  { %3914 = vmatprep.subr.bf16.mxu1 %v4426_v15 }
 0x2e6   :  { %3973 = vmatpush3.bf16.msra.mxu0 %v4327_v33 }
 0x2e7   :  { %3974 = vmatprep.subr.bf16.mxu0 %v4426_v15 }
 0x2e8   :  { %3915 = vmatpush3.bf16.msra.mxu1 %v4328_v34  ;;  %v4374_v34 = vld [vmem:[%s5583_s9 + $0x10] sm:$0xff]  }
 0x2e9   :  { %3916 = vmatprep.subr.bf16.mxu1 %v4426_v15 }
 0x2ea   :  { %3975 = vmatpush3.bf16.msra.mxu0 %v4329_v35  ;;  %v4375_v35 = vld [vmem:[%s5583_s9 + $0x18] sm:$0xff]  }
 0x2eb   :  { %3976 = vmatprep.subr.bf16.mxu0 %v4426_v15 }
 0x2ec   :  { %3917 = vmatpush3.bf16.msra.mxu1 %v4330_v36 }
 0x2ed   :  { %3942 = vmatprep.subr.bf16.mxu1 %v4426_v15 }
 0x2ee   :  { %3977 = vmatpush3.bf16.msra.mxu0 %v4331_v21 }
 0x2ef   :  { %3919 = vmatmul.mubr.bf16.vlgmr.msra.gmra.mrb[40].mxu1 %v1513_v38  ;;  %4002 = vmatprep.subr.bf16.mxu0 %v4426_v15 }
 0x2f0   :  { %3943 = vmatpush3.bf16.msra.mxu1 %v4332_v37  ;;  %3958 = vmatprep.mubr.msk.bf16.mxu1 %vm4427_vm10, %v4426_v15 }
 0x2f1   :  { %3979 = vmatmul.mubr.bf16.vlgmr.msra.gmra.mrb[36].mxu0 %v1958_v40  ;;  %3944 = vmatprep.subr.bf16.mxu1 %v4426_v15 }
 0x2f2   :  { %4003 = vmatpush3.bf16.msra.mxu0 %v4333_v39  ;;  %4018 = vmatprep.mubr.msk.bf16.mxu0 %vm4427_vm10, %v4426_v15 }
 0x2f3   :  { %4004 = vmatprep.subr.bf16.mxu0 %v4426_v15 }
 0x2f4   :  { %3945 = vmatpush3.bf16.msra.mxu1 %v4334_v23 }
 0x2f5   :  { %3946 = vmatprep.subr.bf16.mxu1 %v4426_v15 }
 0x2f6   :  { %4005 = vmatpush3.bf16.msra.mxu0 %v4335_v41 }
 0x2f7   :  { %4006 = vmatprep.subr.bf16.mxu0 %v4426_v15 }
 0x2f8   :  { %3947 = vmatpush3.bf16.msra.mxu1 %v4336_v42 }
 0x2f9   :  { %3948 = vmatprep.subr.bf16.mxu1 %v4426_v15 }
 0x2fa   :  { %4007 = vmatpush3.bf16.msra.mxu0 %v4337_v44 }
 0x2fb   :  { %4008 = vmatprep.subr.bf16.mxu0 %v4426_v15 }
 0x2fc   :  { %3949 = vmatpush3.bf16.msra.mxu1 %v4338_v45 }
 0x2fd   :  { %3950 = vmatprep.subr.bf16.mxu1 %v4426_v15 }
 0x2fe   :  { %4009 = vmatpush3.bf16.msra.mxu0 %v4339_v46 }
 0x2ff   :  { %4010 = vmatprep.subr.bf16.mxu0 %v4426_v15 }
 0x300   :  { %3951 = vmatpush3.bf16.msra.mxu1 %v4340_v48 }
 0x301   :  { %3952 = vmatprep.subr.bf16.mxu1 %v4426_v15 }
 0x302   :  { %4011 = vmatpush3.bf16.msra.mxu0 %v4341_v51 }
 0x303   :  { %4012 = vmatprep.subr.bf16.mxu0 %v4426_v15 }
 0x304   :  { %3953 = vmatpush3.bf16.msra.mxu1 %v4342_v43 }
 0x305   :  { %3954 = vmatprep.subr.bf16.mxu1 %v4426_v15 }
 0x306   :  { %4013 = vmatpush3.bf16.msra.mxu0 %v4343_v52 }
 0x307   :  { %4014 = vmatprep.subr.bf16.mxu0 %v4426_v15 }
 0x308   :  { %3955 = vmatpush3.bf16.msra.mxu1 %v4344_v54 }
 0x309   :  { %3956 = vmatprep.subr.bf16.mxu1 %v4426_v15 }
 0x30a   :  { %4015 = vmatpush3.bf16.msra.mxu0 %v4345_v55 }
 0x30b   :  { %4016 = vmatprep.subr.bf16.mxu0 %v4426_v15 }
 0x30c   :  { %3957 = vmatpush3.bf16.msra.mxu1 %v4346_v56 }
 0x30d   :  { %3982 = vmatprep.subr.bf16.mxu1 %v4426_v15 }
 0x30e   :  { %4017 = vmatpush3.bf16.msra.mxu0 %v4347_v57 }
 0x30f   :  { %3959 = vmatmul.mubr.bf16.vlgmr.msra.gmra.mrb[44].mxu1 %v1846_v60  ;;  %4042 = vmatprep.subr.bf16.mxu0 %v4426_v15 }
 0x310   :  { %3983 = vmatpush3.bf16.msra.mxu1 %v4348_v58  ;;  %3998 = vmatprep.mubr.msk.bf16.mxu1 %vm4427_vm10, %v4426_v15 }
 0x311   :  { %4019 = vmatmul.mubr.bf16.vlgmr.msra.gmra.mrb[40].mxu0 %v2182_v61  ;;  %3984 = vmatprep.subr.bf16.mxu1 %v4426_v15 }
 0x312   :  { %4050 = vmatprep.mubr.msk.bf16.mxu0 %vm4427_vm10, %v4426_v15  ;;  %4043 = vmatpush3.bf16.msra.mxu0 %v4372_v32 }
 0x313   :  { %4044 = vmatprep.subr.bf16.mxu0 %v4426_v15 }
 0x314   :  { %3985 = vmatpush3.bf16.msra.mxu1 %v4349_v62 }
 0x315   :  { %3986 = vmatprep.subr.bf16.mxu1 %v4426_v15 }
 0x316   :  { %4045 = vmatpush3.bf16.msra.mxu0 %v4373_v24  ;;  %v4379_v24 = vld [vmem:[%s5582_s5 + $0x48] sm:$0xff]  }
 0x317   :  { %4046 = vmatprep.subr.bf16.mxu0 %v4426_v15 }
 0x318   :  { %3987 = vmatpush3.bf16.msra.mxu1 %v4350_v0 }
 0x319   :  { %3988 = vmatprep.subr.bf16.mxu1 %v4426_v15 }
 0x31a   :  { %4047 = vmatpush3.bf16.msra.mxu0 %v4374_v34  ;;  %v4387_v34 = vld [vmem:[%s5582_s5 + $0x88] sm:$0xff]  }
 0x31b   :  { %4048 = vmatprep.subr.bf16.mxu0 %v4426_v15 }
 0x31c   :  { %3989 = vmatpush3.bf16.msra.mxu1 %v4351_v49 }
 0x31d   :  { %3990 = vmatprep.subr.bf16.mxu1 %v4426_v15 }
 0x31e   :  { %4049 = vmatpush3.bf16.msra.mxu0 %v4375_v35  ;;  %v4388_v35 = vld [vmem:[%s5582_s5 + $0x90] sm:$0xff]  }
 0x31f   :  { %4054 = vmatprep.subr.bf16.mxu0 %v4426_v15 }
 0x320   :  { %3991 = vmatpush3.bf16.msra.mxu1 %v4352_v16 }
 0x321   :  { %3992 = vmatprep.subr.bf16.mxu1 %v4426_v15 }
 0x324   :  { %3993 = vmatpush3.bf16.msra.mxu1 %v4353_v53  ;;  %v3584_v53 = vld [vmem:[%s5585_s8] ss:$0 sm:$0xff] }
 0x325   :  { %3994 = vmatprep.subr.bf16.mxu1 %v4426_v15 }
 0x328   :  { %3995 = vmatpush3.bf16.msra.mxu1 %v4354_v31 }
 0x329   :  { %3996 = vmatprep.subr.bf16.mxu1 %v4426_v15 }
 0x32c   :  { %3997 = vmatpush3.bf16.msra.mxu1 %v4355_v59 }
 0x32d   :  { %4022 = vmatprep.subr.bf16.mxu1 %v4426_v15 }
 0x32f   :  { %3999 = vmatmul.mubr.bf16.vlgmr.msra.gmra.mrb[48].mxu1 %v2070_v50 }
 0x330   :  { %4023 = vmatpush3.bf16.msra.mxu1 %v4356_v47  ;;  %4038 = vmatprep.mubr.msk.bf16.mxu1 %vm4427_vm10, %v4426_v15 }
 0x331   :  { %4024 = vmatprep.subr.bf16.mxu1 %v4426_v15 }
 0x334   :  { %4025 = vmatpush3.bf16.msra.mxu1 %v4357_v63 }
 0x335   :  { %4026 = vmatprep.subr.bf16.mxu1 %v4426_v15 }
 0x338   :  { %4027 = vmatpush3.bf16.msra.mxu1 %v4358_v4 }
 0x339   :  { %4028 = vmatprep.subr.bf16.mxu1 %v4426_v15 }
 0x33c   :  { %4029 = vmatpush3.bf16.msra.mxu1 %v4359_v5  ;;  %v4376_v5 = vld [vmem:[%s5584_s11] sm:$0xff]  }
 0x33d   :  { %4030 = vmatprep.subr.bf16.mxu1 %v4426_v15 }
 0x340   :  { %4031 = vmatpush3.bf16.msra.mxu1 %v4360_v7 }
 0x341   :  { %4032 = vmatprep.subr.bf16.mxu1 %v4426_v15 }
 0x344   :  { %4033 = vmatpush3.bf16.msra.mxu1 %v4361_v9 }
 0x345   :  { %4034 = vmatprep.subr.bf16.mxu1 %v4426_v15 }
 0x348   :  { %4035 = vmatpush3.bf16.msra.mxu1 %v4362_v11 }
 0x349   :  { %4036 = vmatprep.subr.bf16.mxu1 %v4426_v15 }
 0x34c   :  { %4037 = vmatpush3.bf16.msra.mxu1 %v4363_v8 }
 0x34d   :  { %4082 = vmatprep.subr.bf16.mxu1 %v4426_v15 }
 0x34f   :  { %4039 = vmatmul.mubr.bf16.vlgmr.msra.gmra.mrb[52].mxu1 %v2294_v13  ;;  %v4377_v13 = vld [vmem:[%s5584_s11 + $0x8] sm:$0xff]  }
 0x350   :  { %4083 = vmatpush3.bf16.msra.mxu1 %v4364_v12  ;;  %4098 = vmatprep.mubr.msk.bf16.mxu1 %vm4427_vm10, %v4426_v15 }
 0x351   :  { %4084 = vmatprep.subr.bf16.mxu1 %v4426_v15 }
 0x354   :  { %4085 = vmatpush3.bf16.msra.mxu1 %v4365_v14  ;;  %v3585_v14 = vld [vmem:[%s5586_s10] ss:$0 sm:$0xff] }
 0x355   :  { %4086 = vmatprep.subr.bf16.mxu1 %v4426_v15 }
 0x358   :  { %4087 = vmatpush3.bf16.msra.mxu1 %v4366_v10 }
 0x359   :  { %4088 = vmatprep.subr.bf16.mxu1 %v4426_v15 }
 0x35c   :  { %4089 = vmatpush3.bf16.msra.mxu1 %v4367_v1 }
 0x35d   :  { %4090 = vmatprep.subr.bf16.mxu1 %v4426_v15 }
 0x360   :  { %4091 = vmatpush3.bf16.msra.mxu1 %v4368_v28 }
 0x361   :  { %4092 = vmatprep.subr.bf16.mxu1 %v4426_v15 }
 0x364   :  { %4093 = vmatpush3.bf16.msra.mxu1 %v4369_v2 }
 0x365   :  { %4094 = vmatprep.subr.bf16.mxu1 %v4426_v15 }
 0x368   :  { %4095 = vmatpush3.bf16.msra.mxu1 %v4370_v3 }
 0x369   :  { %4096 = vmatprep.subr.bf16.mxu1 %v4426_v15 }
 0x36c   :  { %4097 = vmatpush3.bf16.msra.mxu1 %v4371_v6 }
 0x36d   :  { %4122 = vmatprep.subr.bf16.mxu1 %v4426_v15 }
 0x36f   :  { %4099 = vmatmul.mubr.bf16.vlgmr.msra.gmra.mrb[56].mxu1 %v2568_v18  ;;  %v4378_v18 = vld [vmem:[%s5582_s5 + $0x40] sm:$0xff]  }
 0x370   :  { %4138 = vmatprep.mubr.msk.bf16.mxu1 %vm4427_vm10, %v4426_v15 }
 0x3a2   :  { %v1618_v20 = vpop.f32.mrb[36].mxu1 }
 0x3a3   :  { %v3900_v25 = vpop.f32.mrb[37].mxu1 }
 0x3a4   :  { %v1621_v17 = vpop.f32.mrb[38].mxu1  ;;  %v1817_v27 = vpop.f32.mrb[32].mxu0  ;;  %v4381_v25 = vld [vmem:[%s5582_s5 + $0x58] sm:$0xff]  }
 0x3a5   :  { %v3901_v29 = vpop.f32.mrb[39].mxu1  ;;  %v3940_v19 = vpop.f32.mrb[33].mxu0  ;;  %v4382_v17 = vld [vmem:[%s5582_s5 + $0x60] sm:$0xff]  }
 0x3a6   :  { %v1820_v30 = vpop.f32.mrb[34].mxu0  ;;  %v4384_v29 = vld [vmem:[%s5582_s5 + $0x70] sm:$0xff]   ;;  %v4385_v19 = vld [vmem:[%s5582_s5 + $0x78] sm:$0xff]  }
 0x3a7   :  { %v3941_v33 = vpop.f32.mrb[35].mxu0  ;;  %v4386_v30 = vld [vmem:[%s5582_s5 + $0x80] sm:$0xff]  }
 0x3a8   :  { %v2589_v33 = vpack.c.bf16 %v5102_v22, %v5102_v22  ;;  %v4389_v22 = vld [vmem:[%s5582_s5 + $0x98] sm:$0xff]  }
 0x3c2   :  { %v1706_v36 = vpop.f32.mrb[40].mxu1 }
 0x3c3   :  { %v1707_v21 = vadd.f32 %v1706_v36, %v1618_v20  ;;  %v3920_v37 = vpop.f32.mrb[41].mxu1  ;;  %v4380_v20 = vld [vmem:[%s5582_s5 + $0x50] sm:$0xff]   ;;  %v4390_v36 = vld [vmem:[%s5582_s5 + $0xa0] sm:$0xff]  }
 0x3c4   :  { %v1709_v38 = vpop.f32.mrb[42].mxu1  ;;  %v2041_v39 = vpop.f32.mrb[36].mxu0  ;;  %v4392_v37 = vld [vmem:[%s5582_s5 + $0xb0] sm:$0xff]  }
 0x3c5   :  { %v3921_v40 = vpop.f32.mrb[43].mxu1  ;;  %v3980_v23 = vpop.f32.mrb[37].mxu0  ;;  %v1823_v41 = vadd.f32 %v1817_v27, %v1707_v21  ;;  %v4383_v27 = vld [vmem:[%s5582_s5 + $0x68] sm:$0xff]   ;;  %v4393_v38 = vld [vmem:[%s5582_s5 + $0xb8] sm:$0xff]  }
 0x3c6   :  { %v2044_v42 = vpop.f32.mrb[38].mxu0  ;;  %v4391_v21 = vld [vmem:[%s5582_s5 + $0xa8] sm:$0xff]   ;;  %v4394_v40 = vld [vmem:[%s5587_s13 + $0x40] sm:$0xff]  }
 0x3c7   :  { %v3981_v44 = vpop.f32.mrb[39].mxu0  ;;  %v4395_v23 = vld [vmem:[%s5587_s13] sm:$0xff]   ;;  %4123 = vmatpush3.bf16.msra.mxu1 %v4394_v40  ;;  %v4398_v42 = vld [vmem:[%s5587_s13 + $0x50] sm:$0xff]  }
 0x3c8   :  { %4124 = vmatprep.subr.bf16.mxu1 %v4426_v15  ;;  %v4399_v44 = vld [vmem:[%s5587_s13 + $0x10] sm:$0xff]  }
 0x3e2   :  { %v1929_v45 = vpop.f32.mrb[44].mxu1 }
 0x3e3   :  { %v1935_v46 = vadd.f32 %v1929_v45, %v1823_v41  ;;  %v3960_v48 = vpop.f32.mrb[45].mxu1  ;;  %v4396_v41 = vld [vmem:[%s5587_s13 + $0x48] sm:$0xff]   ;;  %v4400_v45 = vld [vmem:[%s5587_s13 + $0x58] sm:$0xff]  }
 0x3e4   :  { %v1932_v51 = vpop.f32.mrb[46].mxu1  ;;  %v2265_v43 = vpop.f32.mrb[40].mxu0  ;;  %4125 = vmatpush3.bf16.msra.mxu1 %v4396_v41  ;;  %v4402_v48 = vld [vmem:[%s5587_s13 + $0x60] sm:$0xff]  }
 0x3e5   :  { %v3961_v52 = vpop.f32.mrb[47].mxu1  ;;  %v4020_v54 = vpop.f32.mrb[41].mxu0  ;;  %v2047_v55 = vadd.f32 %v2041_v39, %v1935_v46  ;;  %v2786_v39 = vpack.c.bf16 %v5110_v26, %v5110_v26  ;;  %v4397_v26 = vld [vmem:[%s5587_s13 + $0x8] sm:$0xff]   ;;  %4126 = vmatprep.subr.bf16.mxu1 %v4426_v15  ;;  %v4401_v46 = vld [vmem:[%s5587_s13 + $0x18] sm:$0xff]   ;;  %v4403_v51 = vld [vmem:[%s5587_s13 + $0x20] sm:$0xff]  }
 0x3e6   :  { %v2268_v56 = vpop.f32.mrb[42].mxu0  ;;  %v4405_v52 = vld [vmem:[%s5587_s13 + $0x28] sm:$0xff]   ;;  %v4406_v54 = vld [vmem:[%s5587_s13 + $0x70] sm:$0xff]  }
 0x3e7   :  { %v4021_v57 = vpop.f32.mrb[43].mxu0  ;;  %v4408_v56 = vld [vmem:[%s5587_s13 + $0x78] sm:$0xff]  }
 0x3e8   :  { %4127 = vmatpush3.bf16.msra.mxu1 %v4398_v42  ;;  %v4409_v57 = vld [vmem:[%s5587_s13 + $0x38] sm:$0xff]  }
 0x3e9   :  { %4128 = vmatprep.subr.bf16.mxu1 %v4426_v15 }
 0x3ec   :  { %4129 = vmatpush3.bf16.msra.mxu1 %v4400_v45 }
 0x3ed   :  { %4130 = vmatprep.subr.bf16.mxu1 %v4426_v15 }
 0x3f0   :  { %4131 = vmatpush3.bf16.msra.mxu1 %v4402_v48 }
 0x3f1   :  { %4132 = vmatprep.subr.bf16.mxu1 %v4426_v15 }
 0x402   :  { %v2153_v58 = vpop.f32.mrb[48].mxu1 }
 0x403   :  { %v2159_v60 = vadd.f32 %v2153_v58, %v2047_v55  ;;  %v4000_v61 = vpop.f32.mrb[49].mxu1  ;;  %v4407_v55 = vld [vmem:[%s5587_s13 + $0x30] sm:$0xff]  }
 0x404   :  { %v2156_v62 = vpop.f32.mrb[50].mxu1 }
 0x405   :  { %v4001_v0 = vpop.f32.mrb[51].mxu1  ;;  %v2271_v49 = vadd.f32 %v2265_v43, %v2159_v60  ;;  %v4404_v43 = vld [vmem:[%s5587_s13 + $0x68] sm:$0xff]  }
 0x406   :  { %4133 = vmatpush3.bf16.msra.mxu1 %v4404_v43 }
 0x407   :  { %4134 = vmatprep.subr.bf16.mxu1 %v4426_v15 }
 0x40a   :  { %4135 = vmatpush3.bf16.msra.mxu1 %v4406_v54  ;;  %v3591_v54 = vld [vmem:[%s5592_s12] ss:$0 sm:$0xff] }
 0x40b   :  { %4136 = vmatprep.subr.bf16.mxu1 %v4426_v15 }
 0x40e   :  { %4137 = vmatpush3.bf16.msra.mxu1 %v4408_v56 }
 0x40f   :  { %4162 = vmatprep.subr.bf16.mxu1 %v4426_v15 }
 0x422   :  { %v2377_v16 = vpop.f32.mrb[52].mxu1 }
 0x423   :  { %v2383_v31 = vadd.f32 %v2377_v16, %v2271_v49  ;;  %v4040_v59 = vpop.f32.mrb[53].mxu1 }
 0x424   :  { %v2380_v47 = vpop.f32.mrb[54].mxu1 }
 0x425   :  { %v2391_v50 = vadd.f32 %v3584_v53, %v2383_v31  ;;  %v4041_v63 = vpop.f32.mrb[55].mxu1  ;;  %v3651_v47 = vld [vmem:[%s5589_s6] ss:$0 sm:$0xff] }
 0x427   :  { %v2392_v4 = vmax.f32 %v2391_v50, 0.0 }
 0x429   :  { %v2401_v7 = vpack.c.bf16 %v2392_v4, %v2392_v4 }
 0x42b   :  { %4051 = vmatmul.mubr.msk.bf16.vlgmr.msra.gmra.mrb[44].mxu0 %vm933_vm3, %v2401_v7 }
 0x42c   :  { %4055 = vmatpush3.bf16.msra.mxu0 %v4376_v5  ;;  %4058 = vmatprep.mubr.msk.bf16.mxu0 %vm4427_vm10, %v4426_v15 }
 0x42d   :  { %4056 = vmatprep.subr.bf16.mxu0 %v4426_v15 }
 0x430   :  { %4057 = vmatpush3.bf16.msra.mxu0 %v4377_v13 }
 0x431   :  { %4062 = vmatprep.subr.bf16.mxu0 %v4426_v15 }
 0x442   :  { %v5369_v9 = vpop.f32.mrb[56].mxu1 }
 0x443   :  { %v4100_v11 = vpop.f32.mrb[57].mxu1 }
 0x444   :  { %v2763_v8 = vpop.f32.mrb[58].mxu1 }
 0x445   :  { %v4101_v12 = vpop.f32.mrb[59].mxu1 }
 0x4fe   :  { %v2470_v10 = vpop.f32.mrb[44].mxu0 }
 0x4ff   :  { %v2471_v1 = vadd.f32 %v3585_v14, %v2470_v10  ;;  %v4052_v28 = vpop.f32.mrb[45].mxu0 }
 0x500   :  { %v2473_v2 = vpop.f32.mrb[46].mxu0 }
 0x501   :  { %v2476_v3 = vmax.f32 %v2471_v1, 0.0  ;;  %v4053_v6 = vpop.f32.mrb[47].mxu0 }
 0x502   :  { %v4410_v6 = vld [vmem:[%s5588_s15] sm:$0xff]  }
 0x503   :  { %v2481_v32 = vpack.c.bf16 %v2476_v3, %v2476_v3 }
 0x505   :  { %4059 = vmatmul.mubr.msk.bf16.vlgmr.msra.gmra.mrb[48].mxu0 %vm929_vm2, %v2481_v32 }
 0x506   :  { %4063 = vmatpush3.bf16.msra.mxu0 %v4378_v18  ;;  %4078 = vmatprep.mubr.msk.bf16.mxu0 %vm4427_vm10, %v4426_v15 }
 0x507   :  { %4064 = vmatprep.subr.bf16.mxu0 %v4426_v15 }
 0x50a   :  { %4065 = vmatpush3.bf16.msra.mxu0 %v4379_v24  ;;  %v4411_v24 = vld [vmem:[%s5588_s15 + $0x8] sm:$0xff]  }
 0x50b   :  { %4066 = vmatprep.subr.bf16.mxu0 %v4426_v15 }
 0x50e   :  { %4067 = vmatpush3.bf16.msra.mxu0 %v4380_v20  ;;  %v4412_v20 = vld [vmem:[%s5588_s15 + $0x10] sm:$0xff]  }
 0x50f   :  { %4068 = vmatprep.subr.bf16.mxu0 %v4426_v15 }
 0x512   :  { %4069 = vmatpush3.bf16.msra.mxu0 %v4381_v25  ;;  %v4413_v25 = vld [vmem:[%s5588_s15 + $0x18] sm:$0xff]  }
 0x513   :  { %4070 = vmatprep.subr.bf16.mxu0 %v4426_v15 }
 0x516   :  { %4071 = vmatpush3.bf16.msra.mxu0 %v4382_v17  ;;  %v4414_v17 = vld [vmem:[%s5588_s15 + $0x20] sm:$0xff]  }
 0x517   :  { %4072 = vmatprep.subr.bf16.mxu0 %v4426_v15 }
 0x51a   :  { %4073 = vmatpush3.bf16.msra.mxu0 %v4383_v27  ;;  %v4415_v27 = vld [vmem:[%s5588_s15 + $0x28] sm:$0xff]  }
 0x51b   :  { %4074 = vmatprep.subr.bf16.mxu0 %v4426_v15 }
 0x51e   :  { %4075 = vmatpush3.bf16.msra.mxu0 %v4384_v29  ;;  %v4416_v29 = vld [vmem:[%s5588_s15 + $0x30] sm:$0xff]  }
 0x51f   :  { %4076 = vmatprep.subr.bf16.mxu0 %v4426_v15 }
 0x522   :  { %4077 = vmatpush3.bf16.msra.mxu0 %v4385_v19  ;;  %v4417_v19 = vld [vmem:[%s5588_s15 + $0x38] sm:$0xff]  }
 0x523   :  { %4102 = vmatprep.subr.bf16.mxu0 %v4426_v15 }
 0x525   :  { %4079 = vmatmul.mubr.bf16.vlgmr.msra.gmra.mrb[52].mxu0 %v2589_v33 }
 0x526   :  { %4103 = vmatpush3.bf16.msra.mxu0 %v4386_v30  ;;  %4118 = vmatprep.mubr.msk.bf16.mxu0 %vm4427_vm10, %v4426_v15 }
 0x527   :  { %4104 = vmatprep.subr.bf16.mxu0 %v4426_v15 }
 0x52a   :  { %4105 = vmatpush3.bf16.msra.mxu0 %v4387_v34  ;;  %v3684_v34 = vld [vmem:[%s5590_s14] ss:$0 sm:$0xff]  ;;  %s4428_s14 = smov 12  }
 0x52b   :  { %4106 = vmatprep.subr.bf16.mxu0 %v4426_v15 }
 0x52e   :  { %4107 = vmatpush3.bf16.msra.mxu0 %v4388_v35 }
 0x52f   :  { %4108 = vmatprep.subr.bf16.mxu0 %v4426_v15 }
 0x532   :  { %4109 = vmatpush3.bf16.msra.mxu0 %v4389_v22 }
 0x533   :  { %4110 = vmatprep.subr.bf16.mxu0 %v4426_v15 }
 0x536   :  { %4111 = vmatpush3.bf16.msra.mxu0 %v4390_v36 }
 0x537   :  { %4112 = vmatprep.subr.bf16.mxu0 %v4426_v15 }
 0x53a   :  { %4113 = vmatpush3.bf16.msra.mxu0 %v4391_v21 }
 0x53b   :  { %4114 = vmatprep.subr.bf16.mxu0 %v4426_v15 }
 0x53e   :  { %4115 = vmatpush3.bf16.msra.mxu0 %v4392_v37 }
 0x53f   :  { %4116 = vmatprep.subr.bf16.mxu0 %v4426_v15 }
 0x542   :  { %4117 = vmatpush3.bf16.msra.mxu0 %v4393_v38 }
 0x543   :  { %4142 = vmatprep.subr.bf16.mxu0 %v4426_v15 }
 0x545   :  { %4119 = vmatmul.mubr.bf16.vlgmr.msra.gmra.mrb[56].mxu0 %v2786_v39 }
 0x546   :  { %4158 = vmatprep.mubr.msk.bf16.mxu0 %vm4427_vm10, %v4426_v15  ;;  %4143 = vmatpush3.bf16.msra.mxu0 %v4395_v23 }
 0x547   :  { %4144 = vmatprep.subr.bf16.mxu0 %v4426_v15 }
 0x54a   :  { %4145 = vmatpush3.bf16.msra.mxu0 %v4397_v26 }
 0x54b   :  { %4146 = vmatprep.subr.bf16.mxu0 %v4426_v15 }
 0x54e   :  { %4147 = vmatpush3.bf16.msra.mxu0 %v4399_v44 }
 0x54f   :  { %4148 = vmatprep.subr.bf16.mxu0 %v4426_v15 }
 0x552   :  { %4149 = vmatpush3.bf16.msra.mxu0 %v4401_v46 }
 0x553   :  { %4150 = vmatprep.subr.bf16.mxu0 %v4426_v15 }
 0x556   :  { %4151 = vmatpush3.bf16.msra.mxu0 %v4403_v51 }
 0x557   :  { %4152 = vmatprep.subr.bf16.mxu0 %v4426_v15 }
 0x55a   :  { %4153 = vmatpush3.bf16.msra.mxu0 %v4405_v52 }
 0x55b   :  { %4154 = vmatprep.subr.bf16.mxu0 %v4426_v15 }
 0x55e   :  { %4155 = vmatpush3.bf16.msra.mxu0 %v4407_v55 }
 0x55f   :  { %4156 = vmatprep.subr.bf16.mxu0 %v4426_v15 }
 0x562   :  { %4157 = vmatpush3.bf16.msra.mxu0 %v4409_v57 }
 0x5d8   :  { %v5516_v58 = vpop.f32.mrb[48].mxu0 }
 0x5d9   :  { %v4060_v60 = vpop.f32.mrb[49].mxu0  ;;  %v2539_v55 = vadd.f32 %v3591_v54, %v5516_v58 }
 0x5da   :  { %v2541_v61 = vpop.f32.mrb[50].mxu0 }
 0x5db   :  { %v4061_v62 = vpop.f32.mrb[51].mxu0  ;;  %v2544_v56 = vsub.f32 0.0, %v2539_v55 }
 0x5dd   :  { %v2545_v57 = vmul.f32 1.442695, %v2544_v56 }
 0x5df   :  { %4418 = vpow2.f32 %v2545_v57 }
 0x5e9   :  { %v4419_v60 = vpop.eup %4418 }
 0x5ea   :  { %v2547_v61 = vadd.f32 1.0, %v4419_v60 }
 0x5ec   :  { %4420 = vrcp.f32 %v2547_v61 }
 0x5f6   :  { %v4421_v62 = vpop.eup %4420 }
 0x5f8   :  { %v2672_v0 = vpop.f32.mrb[52].mxu0 }
 0x5f9   :  { %v2761_v49 = vadd.f32 %v5369_v9, %v2672_v0  ;;  %v4080_v16 = vpop.f32.mrb[53].mxu0 }
 0x5fa   :  { %v2675_v53 = vpop.f32.mrb[54].mxu0 }
 0x5fb   :  { %v4081_v31 = vpop.f32.mrb[55].mxu0 }
 0x618   :  { %v2869_v59 = vpop.f32.mrb[56].mxu0 }
 0x619   :  { %v2875_v50 = vadd.f32 %v2869_v59, %v2761_v49  ;;  %v4120_v63 = vpop.f32.mrb[57].mxu0 }
 0x61a   :  { %v2872_v4 = vpop.f32.mrb[58].mxu0 }
 0x61b   :  { %v2883_v5 = vadd.f32 %v3651_v47, %v2875_v50  ;;  %v4121_v7 = vpop.f32.mrb[59].mxu0 }
 0x61d   :  { %v2884_v11 = vmax.f32 %v2883_v5, 0.0 }
 0x61f   :  { %v2886_v8 = vrot.slane %v2884_v11, 1  ;;  %v2888_v12 = vrot.slane %v2884_v11, 2  ;;  %v2890_v13 = vrot.slane %v2884_v11, 3  ;;  %v2912_v14 = vrot.slane %v2884_v11, 4 }
 0x621   :  { %v2914_v9 = vsel %vm1495_vm11, %v2886_v8, %v2888_v12  ;;  %v2892_v10 = vsel %vm1495_vm11, %v2884_v11, %v2886_v8 }
 0x622   :  { %v2915_v1 = vsel %vm1325_vm9, %v2914_v9, %v2890_v13  ;;  %v2893_v28 = vsel %vm1325_vm9, %v2892_v10, %v2888_v12 }
 0x623   :  { %v2916_v2 = vsel %vm1047_vm7, %v2915_v1, %v2912_v14  ;;  %v2894_v3 = vsel %vm1047_vm7, %v2893_v28, %v2890_v13 }
 0x624   :  { %v2934_v18 = vpack.c.bf16 %v2916_v2, %v2916_v2  ;;  %v2911_v32 = vpack.c.bf16 %v2894_v3, %v2894_v3 }
 0x626   :  { %4139 = vmatmul.mubr.bf16.vlgmr.msra.gmra.mrb[60].mxu1 %v2934_v18  ;;  %4159 = vmatmul.mubr.bf16.vlgmr.msra.gmra.mrb[60].mxu0 %v2911_v32 }
 0x627   :  { %4163 = vmatpush3.bf16.msra.mxu1 %v4410_v6  ;;  %4178 = vmatprep.mubr.msk.bf16.mxu1 %vm4427_vm10, %v4426_v15 }
 0x628   :  { %4164 = vmatprep.subr.bf16.mxu1 %v4426_v15 }
 0x62b   :  { %4165 = vmatpush3.bf16.msra.mxu1 %v4411_v24 }
 0x62c   :  { %4166 = vmatprep.subr.bf16.mxu1 %v4426_v15 }
 0x62f   :  { %4167 = vmatpush3.bf16.msra.mxu1 %v4412_v20 }
 0x630   :  { %4168 = vmatprep.subr.bf16.mxu1 %v4426_v15 }
 0x633   :  { %4169 = vmatpush3.bf16.msra.mxu1 %v4413_v25 }
 0x634   :  { %4170 = vmatprep.subr.bf16.mxu1 %v4426_v15 }
 0x637   :  { %4171 = vmatpush3.bf16.msra.mxu1 %v4414_v17 }
 0x638   :  { %4172 = vmatprep.subr.bf16.mxu1 %v4426_v15 }
 0x63b   :  { %4173 = vmatpush3.bf16.msra.mxu1 %v4415_v27 }
 0x63c   :  { %4174 = vmatprep.subr.bf16.mxu1 %v4426_v15 }
 0x63f   :  { %4175 = vmatpush3.bf16.msra.mxu1 %v4416_v29 }
 0x640   :  { %4176 = vmatprep.subr.bf16.mxu1 %v4426_v15  ;;  %v3685_v15 = vld [vmem:[%s5591_s16] ss:$0 sm:$0xff] }
 0x643   :  { %4177 = vmatpush3.bf16.msra.mxu1 %v4417_v19 }
 0x6f9   :  { %v3017_v30 = vpop.f32.mrb[60].mxu1  ;;  %v3105_v33 = vpop.f32.mrb[60].mxu0 }
 0x6fa   :  { %v3106_v35 = vadd.f32 %v3105_v33, %v3017_v30  ;;  %v4140_v22 = vpop.f32.mrb[61].mxu1  ;;  %v4160_v36 = vpop.f32.mrb[61].mxu0 }
 0x6fb   :  { %v3020_v21 = vpop.f32.mrb[62].mxu1  ;;  %v3108_v37 = vpop.f32.mrb[62].mxu0 }
 0x6fc   :  { %v3118_v38 = vadd.f32 %v3684_v34, %v3106_v35  ;;  %v4141_v39 = vpop.f32.mrb[63].mxu1  ;;  %v4161_v40 = vpop.f32.mrb[63].mxu0 }
 0x6fe   :  { %v3119_v23 = vmax.f32 %v3118_v38, 0.0 }
 0x700   :  { %v3136_v41 = vpack.c.bf16 %v3119_v23, %v3119_v23 }
 0x702   :  { %4179 = vmatmul.mubr.bf16.vlgmr.msra.gmra.mrb[64].mxu1 %v3136_v41 }
 0x7d5   :  { %v3226_v26 = vpop.f32.mrb[64].mxu1 }
 0x7d6   :  { %v3227_v42 = vadd.f32 %v3685_v15, %v3226_v26  ;;  %v4180_v44 = vpop.f32.mrb[65].mxu1 }
 0x7d7   :  { %v3229_v45 = vpop.f32.mrb[66].mxu1 }
 0x7d8   :  { %v3233_v46 = vrot.slane %v3227_v42, 1  ;;  %v3235_v48 = vrot.slane %v3227_v42, 2  ;;  %v4181_v51 = vpop.f32.mrb[67].mxu1 }
 0x7da   :  { %v3238_v43 = vsel %vm1495_vm11, %v3227_v42, %v3233_v46  ;;  %v3237_v52 = vsel %vm1495_vm11, %v3233_v46, %v3235_v48 }
 0x7db   :  { %3244 = vrot.lane.b32.xlu1 %v3238_v43, %s4428_s14  ;;  %3240 = vrot.lane.b32.xlu0 %v3237_v52, %s4429_s28 }
 0x84d   :  { %v3245_v0 = vpop.permute.xlu1 %3244  ;;  %v3241_v49 = vpop.permute.xlu0 %3240 }
 0x84e   :  { %v3248_v16 = vsel %vm3247_vm12, %v4421_v62, %v3241_v49 }
 0x84f   :  { %v3250_v53 = vsel %vm3249_vm13, %v3248_v16, %v3245_v0 }
 0x850   :  { %v3252_v31 = vsel %vm3251_vm14, %v3250_v53, 0.0 }
 0x851   :  { %3253 = vst [vmem:[%s5593_s17] sm:$0x3] %v3252_v31 }

</bundles_post_ra>
